<compile_context>
chip_gen: v5e
topology: v5e:2x2
jax: 0.10.0
libtpu: 0.0.40
codegen_flags: <defaults>
</compile_context>

<pallas_src>
import jax
import jax.numpy as jnp
import numpy as np
from jax import lax
from jax.experimental import pallas as pl
from jax.experimental.pallas import tpu as pltpu


# ---------------------------------------------------------------------------
# Weight lifting (done ONCE in pack_params, never inside the jitted forward)
# ---------------------------------------------------------------------------
def _lift_1x1(wconv, W):
    """(Cin, Cout) -> (W*Cin, W*Cout) block-diagonal matrix for the (rows, W*C) slab."""
    return jnp.kron(jnp.eye(W, dtype=wconv.dtype), wconv)


def _lift_row(v, W):
    """(C,) per-channel vector -> (1, W*C) broadcast row matching the slab layout."""
    return jnp.tile(v, (W,)).reshape(1, -1)


def _lift_3x3(ker, W):
    """(3,3,Cin,Cout) HWIO kernel -> 3 banded (W*Cin, W*Cout) matrices, one per ky."""
    mats = []
    for ky in range(3):
        m = sum(jnp.kron(jnp.eye(W, k=1 - kx, dtype=ker.dtype), ker[ky, kx])
                for kx in range(3))
        mats.append(m)
    return mats


def pack_params(params, W, weight_dtype=jnp.bfloat16):
    """One-time preprocessing: lift, stack and bf16-cast all weights.

    Returns a dict of ready-to-use device arrays; call once per parameter set and
    reuse across forward calls (this is the biggest latency win at small shapes).
    """
    cells = params["cells"]
    rows_lat = [_lift_row(params["b_in"], W)]          # latent-width (1, W*lat) rows
    rows_b = []                                        # bottleneck-width (1, W*cb) rows
    w1s, w2s, w3s = [], [], []
    for cell in cells:
        rows_lat += [_lift_row(cell["bn0_scale"], W), _lift_row(cell["bn0_shift"], W)]
        w1s.append(_lift_1x1(cell["w1"], W))
        rows_b.append(_lift_row(cell["b1"], W))
        for layer in cell["layers"]:
            rows_b += [_lift_row(layer["bn_scale"], W), _lift_row(layer["bn_shift"], W),
                       _lift_row(layer["b3"], W)]
            # Pre-stack the three ky bands vertically -> one (3*W*Cb, W*Cb) weight.
            w3s.append(jnp.concatenate(_lift_3x3(layer["w3"], W), axis=0))
        rows_b += [_lift_row(cell["bn1_scale"], W), _lift_row(cell["bn1_shift"], W)]
        w2s.append(_lift_1x1(cell["w2"], W))
        rows_lat.append(_lift_row(cell["b2"], W))

    packed = {
        "w_in": _lift_1x1(params["w_in"], W).astype(weight_dtype),
        "w1": jnp.stack(w1s).astype(weight_dtype),      # (cells, W*lat, W*cb)
        "w2": jnp.stack(w2s).astype(weight_dtype),      # (cells, W*cb, W*lat)
        "w3": jnp.stack(w3s).astype(weight_dtype),      # (cells*layers, 3*W*cb, W*cb)
        "rows_lat": jnp.concatenate(rows_lat, axis=0).astype(jnp.float32),
        "rows_b": jnp.concatenate(rows_b, axis=0).astype(jnp.float32),
    }
    return jax.tree_util.tree_map(jnp.asarray, packed)


# ---------------------------------------------------------------------------
# The fused whole-network Pallas kernel
# ---------------------------------------------------------------------------
def _make_kernel(cells, layers):
    def kernel(x_ref, edge_ref, w_in_ref, rl_ref, rb_ref,
               w1_ref, w2_ref, w3_ref, o_ref):
        rows = x_ref.shape[0]

        def dotf(a, w):
            # bf16 x bf16 matmul, f32 accumulate (same MXU path as before).
            return jnp.dot(a.astype(w.dtype), w, preferred_element_type=jnp.float32)

        def row_lat(i):
            return rl_ref[pl.ds(i, 1), :]      # (1, W*lat) static slice

        def row_b(i):
            return rb_ref[pl.ds(i, 1), :]      # (1, W*cb) static slice

        edge = edge_ref[...]                   # (rows, 2) f32 0/1 mask
        keep_top = edge[:, 0:1]                # 0 at the top row of each image
        keep_bot = edge[:, 1:2]                # 0 at the bottom row of each image

        li = 0   # latent-width row cursor
        bi = 0   # bottleneck-width row cursor
        w3i = 0  # 3x3 stacked-weight cursor

        # input_layer: 1x1 conv as a lane-dense matmul.
        x = dotf(x_ref[...], w_in_ref[...]) + row_lat(li); li += 1

        for c in range(cells):
            s0 = row_lat(li); t0 = row_lat(li + 1); li += 2
            # BN + ReLU + 1x1 conv (latent -> bottleneck)
            h = dotf(jnp.maximum(x * s0 + t0, 0.0), w1_ref[c]) + row_b(bi); bi += 1

            for _ in range(layers):
                s = row_b(bi); t = row_b(bi + 1); b3 = row_b(bi + 2); bi += 3
                a = jnp.maximum(h * s + t, 0.0)
                # Exact f32 vertical shifts via XLU roll + edge mask (SAME padding
                # at image top/bottom; the mask also kills cross-image wraparound).
                up = pltpu.roll(a, 1, 0) * keep_top          # up[r] = a[r-1]
                dn = pltpu.roll(a, rows - 1, 0) * keep_bot   # dn[r] = a[r+1]
                # One fused K=3*W*Cb matmul: [up | a | dn] @ [L0; L1; L2].
                h = dotf(jnp.concatenate([up, a, dn], axis=1), w3_ref[w3i]) + b3
                w3i += 1

            s1 = row_b(bi); t1 = row_b(bi + 1); bi += 2
            # BN + ReLU + 1x1 conv (bottleneck -> latent) + residual average
            out = dotf(jnp.maximum(h * s1 + t1, 0.0), w2_ref[c]) + row_lat(li); li += 1
            x = (x + out) * 0.5

        o_ref[...] = x.astype(o_ref.dtype)

    return kernel


# ---------------------------------------------------------------------------
# Grid sizing helpers
# ---------------------------------------------------------------------------
def _num_tensorcores():
    """Conservative TensorCore-per-device count (1 on v5e/v6e; best effort elsewhere)."""
    try:
        info = pltpu.get_tpu_info()
        for name in ("num_cores", "tensorcore_count", "num_tensorcores", "cores_per_chip"):
            v = getattr(info, name, None)
            if isinstance(v, int) and v > 0:
                return v
    except Exception:
        pass
    try:
        v = getattr(jax.devices()[0], "num_cores", None)
        if isinstance(v, int) and v > 0:
            return v
    except Exception:
        pass
    return 1


def _images_per_step(n, h, num_cores, target_rows=512):
    """Whole images per grid step.

    Single grid step on single-TC chips (grid is a serial loop there); split the
    batch across >=num_cores steps only when the chip has multiple TensorCores.
    """
    if n <= 1:
        return 1
    k = max(1, min(n, target_rows // max(h, 1)))
    if num_cores > 1:
        k = max(1, min(k, n // num_cores))
    while n % k:
        k -= 1
    if (k * h) % 8 != 0 and k != n:
        k = n  # full-extent block is always a legal block shape
    return k


# ---------------------------------------------------------------------------
# Forward pass (Pallas) and plain-JAX reference
# ---------------------------------------------------------------------------
@jax.jit
def resnet_conv2d_forward(packed, x_nchw):
    n, cin, h, w = x_nchw.shape
    lat = packed["w_in"].shape[1] // w
    cells = packed["w1"].shape[0]
    layers = (packed["w3"].shape[0] // cells) if cells else 0

    # Layout glue: NCHW -> lane-dense (N*H, W*C) channels-last slab.
    x = jnp.transpose(x_nchw, (0, 2, 3, 1)).reshape(n * h, w * cin)

    k = _images_per_step(n, h, _num_tensorcores())
    rows = k * h
    grid = (n // k,)

    # (rows, 2) 0/1 edge mask: col 0 keeps all but the top row of each image,
    # col 1 keeps all but the bottom row (identical for every grid step).
    rid = jnp.arange(rows, dtype=jnp.int32) % h
    edge = jnp.stack([(rid != 0).astype(jnp.float32),
                      (rid != h - 1).astype(jnp.float32)], axis=1)

    def _const_spec(a):
        nd = a.ndim
        return pl.BlockSpec(a.shape, lambda i, _nd=nd: (0,) * _nd)

    const_inputs = [edge, packed["w_in"], packed["rows_lat"], packed["rows_b"],
                    packed["w1"], packed["w2"], packed["w3"]]
    inputs = [x] + const_inputs
    in_specs = [pl.BlockSpec((rows, w * cin), lambda i: (i, 0))] + \
               [_const_spec(a) for a in const_inputs]

    # VMEM limit sized from the actual block footprint (double-buffered) + headroom.
    block_bytes = rows * w * cin * 4 + rows * w * lat * 4
    block_bytes += sum(int(np.prod(a.shape)) * a.dtype.itemsize for a in const_inputs)
    vmem_limit = int(min(48 * 2 ** 20, max(16 * 2 ** 20, 6 * block_bytes)))

    kernel = _make_kernel(cells, layers)

    out_slab = pl.pallas_call(
        kernel,
        out_shape=jax.ShapeDtypeStruct((n * h, w * lat), jnp.float32),
        grid=grid,
        in_specs=in_specs,
        out_specs=pl.BlockSpec((rows, w * lat), lambda i: (i, 0)),
        compiler_params=pltpu.CompilerParams(
            dimension_semantics=("parallel",) if grid[0] > 1 else ("arbitrary",),
            vmem_limit_bytes=vmem_limit,
        ),
    )(*inputs)

    return jnp.transpose(out_slab.reshape(n, h, w, lat), (0, 3, 1, 2))


def reference_forward(params, x_nchw):
    x = jnp.transpose(x_nchw, (0, 2, 3, 1))

    def conv1x1(a, w, b):
        return jnp.einsum("nhwc,cd->nhwd", a, w,
                          precision=lax.Precision.HIGHEST) + b

    def conv3x3(a, w, b):
        return lax.conv_general_dilated(
            a, w, (1, 1), "SAME",
            dimension_numbers=("NHWC", "HWIO", "NHWC"),
            precision=lax.Precision.HIGHEST) + b

    x = conv1x1(x, params["w_in"], params["b_in"])
    for cell in params["cells"]:
        hidden = conv1x1(jnp.maximum(x * cell["bn0_scale"] + cell["bn0_shift"], 0.0),
                         cell["w1"], cell["b1"])
        for layer in cell["layers"]:
            act = jnp.maximum(hidden * layer["bn_scale"] + layer["bn_shift"], 0.0)
            hidden = conv3x3(act, layer["w3"], layer["b3"])
        out = conv1x1(jnp.maximum(hidden * cell["bn1_scale"] + cell["bn1_shift"], 0.0),
                      cell["w2"], cell["b2"])
        x = (x + out) / 2.0
    return jnp.transpose(x, (0, 3, 1, 2))


# ---------------------------------------------------------------------------
# Parameters (deterministic, synthetic, eval-mode BN folded to scale/shift)
# ---------------------------------------------------------------------------
def _bn_scale_shift(key, c, eps=1e-5):
    k1, k2, k3, k4 = jax.random.split(key, 4)
    gamma = jax.random.uniform(k1, (c,), jnp.float32, 0.5, 1.5)
    beta = jax.random.normal(k2, (c,), jnp.float32) * 0.1
    mean = jax.random.normal(k3, (c,), jnp.float32) * 0.1
    var = jax.random.uniform(k4, (c,), jnp.float32, 0.5, 1.5)
    scale = gamma / jnp.sqrt(var + eps)
    shift = beta - mean * scale
    return scale, shift


def init_params(key, input_dim, cells_per_block, layers_per_cell, latent_dim):
    bneck = latent_dim // 4
    n_keys = 4 + cells_per_block * (6 + 3 * layers_per_cell)
    keys = iter(jax.random.split(key, n_keys))

    def conv_w(cin, cout):
        return jax.random.normal(next(keys), (cin, cout), jnp.float32) * 0.1

    def conv_b(cout):
        return jax.random.normal(next(keys), (cout,), jnp.float32) * 0.05

    params = {"w_in": conv_w(input_dim, latent_dim), "b_in": conv_b(latent_dim),
              "cells": []}
    for _ in range(cells_per_block):
        bn0_s, bn0_b = _bn_scale_shift(next(keys), latent_dim)
        cell = {"bn0_scale": bn0_s, "bn0_shift": bn0_b,
                "w1": conv_w(latent_dim, bneck), "b1": conv_b(bneck),
                "layers": []}
        for _ in range(layers_per_cell):
            bn_s, bn_b = _bn_scale_shift(next(keys), bneck)
            cell["layers"].append({
                "bn_scale": bn_s, "bn_shift": bn_b,
                # HWIO layout, (3, 3, bneck, bneck)
                "w3": jax.random.normal(next(keys), (3, 3, bneck, bneck),
                                        jnp.float32) * 0.1,
                "b3": conv_b(bneck)})
        bn1_s, bn1_b = _bn_scale_shift(next(keys), bneck)
        cell.update({"bn1_scale": bn1_s, "bn1_shift": bn1_b,
                     "w2": conv_w(bneck, latent_dim), "b2": conv_b(latent_dim)})
        params["cells"].append(cell)
    return params


# ---------------------------------------------------------------------------
if __name__ == "__main__":
    # Small shapes consistent with the module:
    # batch=2, input_dim=4, spatial=16x16, latent_dim=32 (bottleneck=8),
    # cells_per_block=2, layers_per_cell=1, dropout=0.0
    batch, input_dim, spatial, latent_dim = 2, 4, 16, 32
    cells_per_block, layers_per_cell = 2, 1

    key = jax.random.PRNGKey(0)
    k_params, k_x = jax.random.split(key)
    params = init_params(k_params, input_dim, cells_per_block, layers_per_cell,
                         latent_dim)
    x = jax.random.normal(k_x, (batch, input_dim, spatial, spatial), jnp.float32)

    # One-time weight lifting / packing (hoisted out of the per-call forward).
    packed = pack_params(params, spatial)

    out = jax.block_until_ready(resnet_conv2d_forward(packed, x))
    ref = jax.block_until_ready(reference_forward(params, x))

    assert out.shape == (batch, latent_dim, spatial, spatial), out.shape
    # Matmuls run on bf16 MXU passes (bf16 weights, f32 accumulate) while the
    # reference uses Precision.HIGHEST -> deliberately relaxed tolerance.
    assert np.allclose(np.asarray(out), np.asarray(ref), rtol=1e-2, atol=1e-2), (
        "mismatch vs reference")

    print("KERNEL_OK")
</pallas_src>

<mosaic_0001>
module attributes {stable_mosaic.version = 11 : i64} {
  func.func @kernel(%arg0: i32, %arg1: memref<32x64xf32, #tpu.memory_space<vmem>>, %arg2: memref<32x2xf32, #tpu.memory_space<vmem>>, %arg3: memref<64x512xbf16, #tpu.memory_space<vmem>>, %arg4: memref<7x512xf32, #tpu.memory_space<vmem>>, %arg5: memref<12x128xf32, #tpu.memory_space<vmem>>, %arg6: memref<2x512x128xbf16, #tpu.memory_space<vmem>>, %arg7: memref<2x128x512xbf16, #tpu.memory_space<vmem>>, %arg8: memref<2x384x128xbf16, #tpu.memory_space<vmem>>, %arg9: memref<32x512xf32, #tpu.memory_space<vmem>>) attributes {dimension_semantics = [#tpu.dimension_semantics<arbitrary>], iteration_bounds = array<i64: 1>, scalar_prefetch = 0 : i64, scratch_operands = 0 : i64, tpu.core_type = #tpu.core_type<tc>, window_params = [{transform_indices = @transform_0, window_bounds = array<i64: 32, 64>}, {pipeline_mode = #tpu.pipeline_mode<synchronous>, transform_indices = @transform_1, window_bounds = array<i64: 32, 2>}, {pipeline_mode = #tpu.pipeline_mode<synchronous>, transform_indices = @transform_2, window_bounds = array<i64: 64, 512>}, {pipeline_mode = #tpu.pipeline_mode<synchronous>, transform_indices = @transform_3, window_bounds = array<i64: 7, 512>}, {pipeline_mode = #tpu.pipeline_mode<synchronous>, transform_indices = @transform_4, window_bounds = array<i64: 12, 128>}, {pipeline_mode = #tpu.pipeline_mode<synchronous>, transform_indices = @transform_5, window_bounds = array<i64: 2, 512, 128>}, {pipeline_mode = #tpu.pipeline_mode<synchronous>, transform_indices = @transform_6, window_bounds = array<i64: 2, 128, 512>}, {pipeline_mode = #tpu.pipeline_mode<synchronous>, transform_indices = @transform_7, window_bounds = array<i64: 2, 384, 128>}, {transform_indices = @transform_8, window_bounds = array<i64: 32, 512>}]} {
    %c0 = arith.constant 0 : index
    %c0_0 = arith.constant 0 : index
    %0 = vector.load %arg2[%c0, %c0_0] : memref<32x2xf32, #tpu.memory_space<vmem>>, vector<32x2xf32>
    %1 = vector.extract_strided_slice %0 {offsets = [0, 0], sizes = [32, 1], strides = [1, 1]} : vector<32x2xf32> to vector<32x1xf32>
    %2 = vector.extract_strided_slice %0 {offsets = [0, 1], sizes = [32, 1], strides = [1, 1]} : vector<32x2xf32> to vector<32x1xf32>
    %c0_1 = arith.constant 0 : index
    %c0_2 = arith.constant 0 : index
    %3 = vector.load %arg1[%c0_1, %c0_2] : memref<32x64xf32, #tpu.memory_space<vmem>>, vector<32x64xf32>
    %c0_3 = arith.constant 0 : index
    %c0_4 = arith.constant 0 : index
    %4 = vector.load %arg3[%c0_3, %c0_4] : memref<64x512xbf16, #tpu.memory_space<vmem>>, vector<64x512xbf16>
    %5 = arith.truncf %3 : vector<32x64xf32> to vector<32x64xbf16>
    %cst = arith.constant dense<0.000000e+00> : vector<32x512xf32>
    %6 = tpu.matmul %5, %4, %cst {dimension_numbers = #tpu.dot_dimension_numbers<[1], [0], [0], [1], [0, 0, 1, 1], [], []>} : vector<32x64xbf16>, vector<64x512xbf16>, vector<32x512xf32> -> vector<32x512xf32>
    %c0_5 = arith.constant 0 : index
    %c0_6 = arith.constant 0 : index
    %7 = vector.load %arg4[%c0_5, %c0_6] : memref<7x512xf32, #tpu.memory_space<vmem>>, vector<1x512xf32>
    %8 = vector.broadcast %7 : vector<1x512xf32> to vector<32x512xf32>
    %9 = arith.addf %6, %8 : vector<32x512xf32>
    %c1 = arith.constant 1 : index
    %c0_7 = arith.constant 0 : index
    %10 = vector.load %arg4[%c1, %c0_7] : memref<7x512xf32, #tpu.memory_space<vmem>>, vector<1x512xf32>
    %c2 = arith.constant 2 : index
    %c0_8 = arith.constant 0 : index
    %11 = vector.load %arg4[%c2, %c0_8] : memref<7x512xf32, #tpu.memory_space<vmem>>, vector<1x512xf32>
    %12 = vector.broadcast %10 : vector<1x512xf32> to vector<32x512xf32>
    %13 = arith.mulf %9, %12 : vector<32x512xf32>
    %14 = vector.broadcast %11 : vector<1x512xf32> to vector<32x512xf32>
    %15 = arith.addf %13, %14 : vector<32x512xf32>
    %cst_9 = arith.constant 0.000000e+00 : f32
    %16 = vector.broadcast %cst_9 : f32 to vector<32x512xf32>
    %17 = arith.maximumf %15, %16 : vector<32x512xf32>
    %c0_10 = arith.constant 0 : index
    %c0_11 = arith.constant 0 : index
    %c0_12 = arith.constant 0 : index
    %18 = vector.load %arg6[%c0_10, %c0_11, %c0_12] : memref<2x512x128xbf16, #tpu.memory_space<vmem>>, vector<1x512x128xbf16>
    %19 = vector.shape_cast %18 : vector<1x512x128xbf16> to vector<512x128xbf16>
    %20 = arith.truncf %17 : vector<32x512xf32> to vector<32x512xbf16>
    %cst_13 = arith.constant dense<0.000000e+00> : vector<32x128xf32>
    %21 = tpu.matmul %20, %19, %cst_13 {dimension_numbers = #tpu.dot_dimension_numbers<[1], [0], [0], [1], [0, 0, 1, 1], [], []>} : vector<32x512xbf16>, vector<512x128xbf16>, vector<32x128xf32> -> vector<32x128xf32>
    %c0_14 = arith.constant 0 : index
    %c0_15 = arith.constant 0 : index
    %22 = vector.load %arg5[%c0_14, %c0_15] : memref<12x128xf32, #tpu.memory_space<vmem>>, vector<1x128xf32>
    %23 = vector.broadcast %22 : vector<1x128xf32> to vector<32x128xf32>
    %24 = arith.addf %21, %23 : vector<32x128xf32>
    %c1_16 = arith.constant 1 : index
    %c0_17 = arith.constant 0 : index
    %25 = vector.load %arg5[%c1_16, %c0_17] : memref<12x128xf32, #tpu.memory_space<vmem>>, vector<1x128xf32>
    %c2_18 = arith.constant 2 : index
    %c0_19 = arith.constant 0 : index
    %26 = vector.load %arg5[%c2_18, %c0_19] : memref<12x128xf32, #tpu.memory_space<vmem>>, vector<1x128xf32>
    %c3 = arith.constant 3 : index
    %c0_20 = arith.constant 0 : index
    %27 = vector.load %arg5[%c3, %c0_20] : memref<12x128xf32, #tpu.memory_space<vmem>>, vector<1x128xf32>
    %28 = vector.broadcast %25 : vector<1x128xf32> to vector<32x128xf32>
    %29 = arith.mulf %24, %28 : vector<32x128xf32>
    %30 = vector.broadcast %26 : vector<1x128xf32> to vector<32x128xf32>
    %31 = arith.addf %29, %30 : vector<32x128xf32>
    %cst_21 = arith.constant 0.000000e+00 : f32
    %32 = vector.broadcast %cst_21 : f32 to vector<32x128xf32>
    %33 = arith.maximumf %31, %32 : vector<32x128xf32>
    %c1_i32 = arith.constant 1 : i32
    %34 = tpu.dynamic_rotate %33 by %c1_i32 dim 0 : vector<32x128xf32>, i32 -> vector<32x128xf32>
    %35 = vector.broadcast %1 : vector<32x1xf32> to vector<32x128xf32>
    %36 = arith.mulf %34, %35 : vector<32x128xf32>
    %c31_i32 = arith.constant 31 : i32
    %37 = tpu.dynamic_rotate %33 by %c31_i32 dim 0 : vector<32x128xf32>, i32 -> vector<32x128xf32>
    %38 = vector.broadcast %2 : vector<32x1xf32> to vector<32x128xf32>
    %39 = arith.mulf %37, %38 : vector<32x128xf32>
    %40 = tpu.concatenate %36, %33, %39 in 1 : vector<32x128xf32>, vector<32x128xf32>, vector<32x128xf32> -> vector<32x384xf32>
    %c0_22 = arith.constant 0 : index
    %c0_23 = arith.constant 0 : index
    %c0_24 = arith.constant 0 : index
    %41 = vector.load %arg8[%c0_22, %c0_23, %c0_24] : memref<2x384x128xbf16, #tpu.memory_space<vmem>>, vector<1x384x128xbf16>
    %42 = vector.shape_cast %41 : vector<1x384x128xbf16> to vector<384x128xbf16>
    %43 = arith.truncf %40 : vector<32x384xf32> to vector<32x384xbf16>
    %cst_25 = arith.constant dense<0.000000e+00> : vector<32x128xf32>
    %44 = tpu.matmul %43, %42, %cst_25 {dimension_numbers = #tpu.dot_dimension_numbers<[1], [0], [0], [1], [0, 0, 1, 1], [], []>} : vector<32x384xbf16>, vector<384x128xbf16>, vector<32x128xf32> -> vector<32x128xf32>
    %45 = vector.broadcast %27 : vector<1x128xf32> to vector<32x128xf32>
    %46 = arith.addf %44, %45 : vector<32x128xf32>
    %c4 = arith.constant 4 : index
    %c0_26 = arith.constant 0 : index
    %47 = vector.load %arg5[%c4, %c0_26] : memref<12x128xf32, #tpu.memory_space<vmem>>, vector<1x128xf32>
    %c5 = arith.constant 5 : index
    %c0_27 = arith.constant 0 : index
    %48 = vector.load %arg5[%c5, %c0_27] : memref<12x128xf32, #tpu.memory_space<vmem>>, vector<1x128xf32>
    %49 = vector.broadcast %47 : vector<1x128xf32> to vector<32x128xf32>
    %50 = arith.mulf %46, %49 : vector<32x128xf32>
    %51 = vector.broadcast %48 : vector<1x128xf32> to vector<32x128xf32>
    %52 = arith.addf %50, %51 : vector<32x128xf32>
    %cst_28 = arith.constant 0.000000e+00 : f32
    %53 = vector.broadcast %cst_28 : f32 to vector<32x128xf32>
    %54 = arith.maximumf %52, %53 : vector<32x128xf32>
    %c0_29 = arith.constant 0 : index
    %c0_30 = arith.constant 0 : index
    %c0_31 = arith.constant 0 : index
    %55 = vector.load %arg7[%c0_29, %c0_30, %c0_31] : memref<2x128x512xbf16, #tpu.memory_space<vmem>>, vector<1x128x512xbf16>
    %56 = vector.shape_cast %55 : vector<1x128x512xbf16> to vector<128x512xbf16>
    %57 = arith.truncf %54 : vector<32x128xf32> to vector<32x128xbf16>
    %cst_32 = arith.constant dense<0.000000e+00> : vector<32x512xf32>
    %58 = tpu.matmul %57, %56, %cst_32 {dimension_numbers = #tpu.dot_dimension_numbers<[1], [0], [0], [1], [0, 0, 1, 1], [], []>} : vector<32x128xbf16>, vector<128x512xbf16>, vector<32x512xf32> -> vector<32x512xf32>
    %c3_33 = arith.constant 3 : index
    %c0_34 = arith.constant 0 : index
    %59 = vector.load %arg4[%c3_33, %c0_34] : memref<7x512xf32, #tpu.memory_space<vmem>>, vector<1x512xf32>
    %60 = vector.broadcast %59 : vector<1x512xf32> to vector<32x512xf32>
    %61 = arith.addf %58, %60 : vector<32x512xf32>
    %62 = arith.addf %9, %61 : vector<32x512xf32>
    %cst_35 = arith.constant 5.000000e-01 : f32
    %63 = vector.broadcast %cst_35 : f32 to vector<32x512xf32>
    %64 = arith.mulf %62, %63 : vector<32x512xf32>
    %c4_36 = arith.constant 4 : index
    %c0_37 = arith.constant 0 : index
    %65 = vector.load %arg4[%c4_36, %c0_37] : memref<7x512xf32, #tpu.memory_space<vmem>>, vector<1x512xf32>
    %c5_38 = arith.constant 5 : index
    %c0_39 = arith.constant 0 : index
    %66 = vector.load %arg4[%c5_38, %c0_39] : memref<7x512xf32, #tpu.memory_space<vmem>>, vector<1x512xf32>
    %67 = vector.broadcast %65 : vector<1x512xf32> to vector<32x512xf32>
    %68 = arith.mulf %64, %67 : vector<32x512xf32>
    %69 = vector.broadcast %66 : vector<1x512xf32> to vector<32x512xf32>
    %70 = arith.addf %68, %69 : vector<32x512xf32>
    %cst_40 = arith.constant 0.000000e+00 : f32
    %71 = vector.broadcast %cst_40 : f32 to vector<32x512xf32>
    %72 = arith.maximumf %70, %71 : vector<32x512xf32>
    %c1_41 = arith.constant 1 : index
    %c0_42 = arith.constant 0 : index
    %c0_43 = arith.constant 0 : index
    %73 = vector.load %arg6[%c1_41, %c0_42, %c0_43] : memref<2x512x128xbf16, #tpu.memory_space<vmem>>, vector<1x512x128xbf16>
    %74 = vector.shape_cast %73 : vector<1x512x128xbf16> to vector<512x128xbf16>
    %75 = arith.truncf %72 : vector<32x512xf32> to vector<32x512xbf16>
    %cst_44 = arith.constant dense<0.000000e+00> : vector<32x128xf32>
    %76 = tpu.matmul %75, %74, %cst_44 {dimension_numbers = #tpu.dot_dimension_numbers<[1], [0], [0], [1], [0, 0, 1, 1], [], []>} : vector<32x512xbf16>, vector<512x128xbf16>, vector<32x128xf32> -> vector<32x128xf32>
    %c6 = arith.constant 6 : index
    %c0_45 = arith.constant 0 : index
    %77 = vector.load %arg5[%c6, %c0_45] : memref<12x128xf32, #tpu.memory_space<vmem>>, vector<1x128xf32>
    %78 = vector.broadcast %77 : vector<1x128xf32> to vector<32x128xf32>
    %79 = arith.addf %76, %78 : vector<32x128xf32>
    %c7 = arith.constant 7 : index
    %c0_46 = arith.constant 0 : index
    %80 = vector.load %arg5[%c7, %c0_46] : memref<12x128xf32, #tpu.memory_space<vmem>>, vector<1x128xf32>
    %c8 = arith.constant 8 : index
    %c0_47 = arith.constant 0 : index
    %81 = vector.load %arg5[%c8, %c0_47] : memref<12x128xf32, #tpu.memory_space<vmem>>, vector<1x128xf32>
    %c9 = arith.constant 9 : index
    %c0_48 = arith.constant 0 : index
    %82 = vector.load %arg5[%c9, %c0_48] : memref<12x128xf32, #tpu.memory_space<vmem>>, vector<1x128xf32>
    %83 = vector.broadcast %80 : vector<1x128xf32> to vector<32x128xf32>
    %84 = arith.mulf %79, %83 : vector<32x128xf32>
    %85 = vector.broadcast %81 : vector<1x128xf32> to vector<32x128xf32>
    %86 = arith.addf %84, %85 : vector<32x128xf32>
    %cst_49 = arith.constant 0.000000e+00 : f32
    %87 = vector.broadcast %cst_49 : f32 to vector<32x128xf32>
    %88 = arith.maximumf %86, %87 : vector<32x128xf32>
    %c1_i32_50 = arith.constant 1 : i32
    %89 = tpu.dynamic_rotate %88 by %c1_i32_50 dim 0 : vector<32x128xf32>, i32 -> vector<32x128xf32>
    %90 = vector.broadcast %1 : vector<32x1xf32> to vector<32x128xf32>
    %91 = arith.mulf %89, %90 : vector<32x128xf32>
    %c31_i32_51 = arith.constant 31 : i32
    %92 = tpu.dynamic_rotate %88 by %c31_i32_51 dim 0 : vector<32x128xf32>, i32 -> vector<32x128xf32>
    %93 = vector.broadcast %2 : vector<32x1xf32> to vector<32x128xf32>
    %94 = arith.mulf %92, %93 : vector<32x128xf32>
    %95 = tpu.concatenate %91, %88, %94 in 1 : vector<32x128xf32>, vector<32x128xf32>, vector<32x128xf32> -> vector<32x384xf32>
    %c1_52 = arith.constant 1 : index
    %c0_53 = arith.constant 0 : index
    %c0_54 = arith.constant 0 : index
    %96 = vector.load %arg8[%c1_52, %c0_53, %c0_54] : memref<2x384x128xbf16, #tpu.memory_space<vmem>>, vector<1x384x128xbf16>
    %97 = vector.shape_cast %96 : vector<1x384x128xbf16> to vector<384x128xbf16>
    %98 = arith.truncf %95 : vector<32x384xf32> to vector<32x384xbf16>
    %cst_55 = arith.constant dense<0.000000e+00> : vector<32x128xf32>
    %99 = tpu.matmul %98, %97, %cst_55 {dimension_numbers = #tpu.dot_dimension_numbers<[1], [0], [0], [1], [0, 0, 1, 1], [], []>} : vector<32x384xbf16>, vector<384x128xbf16>, vector<32x128xf32> -> vector<32x128xf32>
    %100 = vector.broadcast %82 : vector<1x128xf32> to vector<32x128xf32>
    %101 = arith.addf %99, %100 : vector<32x128xf32>
    %c10 = arith.constant 10 : index
    %c0_56 = arith.constant 0 : index
    %102 = vector.load %arg5[%c10, %c0_56] : memref<12x128xf32, #tpu.memory_space<vmem>>, vector<1x128xf32>
    %c11 = arith.constant 11 : index
    %c0_57 = arith.constant 0 : index
    %103 = vector.load %arg5[%c11, %c0_57] : memref<12x128xf32, #tpu.memory_space<vmem>>, vector<1x128xf32>
    %104 = vector.broadcast %102 : vector<1x128xf32> to vector<32x128xf32>
    %105 = arith.mulf %101, %104 : vector<32x128xf32>
    %106 = vector.broadcast %103 : vector<1x128xf32> to vector<32x128xf32>
    %107 = arith.addf %105, %106 : vector<32x128xf32>
    %cst_58 = arith.constant 0.000000e+00 : f32
    %108 = vector.broadcast %cst_58 : f32 to vector<32x128xf32>
    %109 = arith.maximumf %107, %108 : vector<32x128xf32>
    %c1_59 = arith.constant 1 : index
    %c0_60 = arith.constant 0 : index
    %c0_61 = arith.constant 0 : index
    %110 = vector.load %arg7[%c1_59, %c0_60, %c0_61] : memref<2x128x512xbf16, #tpu.memory_space<vmem>>, vector<1x128x512xbf16>
    %111 = vector.shape_cast %110 : vector<1x128x512xbf16> to vector<128x512xbf16>
    %112 = arith.truncf %109 : vector<32x128xf32> to vector<32x128xbf16>
    %cst_62 = arith.constant dense<0.000000e+00> : vector<32x512xf32>
    %113 = tpu.matmul %112, %111, %cst_62 {dimension_numbers = #tpu.dot_dimension_numbers<[1], [0], [0], [1], [0, 0, 1, 1], [], []>} : vector<32x128xbf16>, vector<128x512xbf16>, vector<32x512xf32> -> vector<32x512xf32>
    %c6_63 = arith.constant 6 : index
    %c0_64 = arith.constant 0 : index
    %114 = vector.load %arg4[%c6_63, %c0_64] : memref<7x512xf32, #tpu.memory_space<vmem>>, vector<1x512xf32>
    %115 = vector.broadcast %114 : vector<1x512xf32> to vector<32x512xf32>
    %116 = arith.addf %113, %115 : vector<32x512xf32>
    %117 = arith.addf %64, %116 : vector<32x512xf32>
    %cst_65 = arith.constant 5.000000e-01 : f32
    %118 = vector.broadcast %cst_65 : f32 to vector<32x512xf32>
    %119 = arith.mulf %117, %118 : vector<32x512xf32>
    %c0_66 = arith.constant 0 : index
    %c0_67 = arith.constant 0 : index
    %120 = vector.load %arg9[%c0_66, %c0_67] : memref<32x512xf32, #tpu.memory_space<vmem>>, vector<32x512xf32>
    tpu.vector_store %arg9[%c0_66, %c0_67], %119 {strides = array<i32>} : memref<32x512xf32, #tpu.memory_space<vmem>>, vector<32x512xf32>,
    return
  }
  func.func @transform_0(%arg0: i32) -> (i32, i32) {
    %c0_i32 = arith.constant 0 : i32
    %c0_i32_0 = arith.constant 0 : i32
    return %arg0, %c0_i32 : i32, i32
  }
  func.func @transform_1(%arg0: i32) -> (i32, i32) {
    %c0_i32 = arith.constant 0 : i32
    %c0_i32_0 = arith.constant 0 : i32
    %c0_i32_1 = arith.constant 0 : i32
    return %c0_i32, %c0_i32_0 : i32, i32
  }
  func.func @transform_2(%arg0: i32) -> (i32, i32) {
    %c0_i32 = arith.constant 0 : i32
    %c0_i32_0 = arith.constant 0 : i32
    %c0_i32_1 = arith.constant 0 : i32
    return %c0_i32, %c0_i32_0 : i32, i32
  }
  func.func @transform_3(%arg0: i32) -> (i32, i32) {
    %c0_i32 = arith.constant 0 : i32
    %c0_i32_0 = arith.constant 0 : i32
    %c0_i32_1 = arith.constant 0 : i32
    return %c0_i32, %c0_i32_0 : i32, i32
  }
  func.func @transform_4(%arg0: i32) -> (i32, i32) {
    %c0_i32 = arith.constant 0 : i32
    %c0_i32_0 = arith.constant 0 : i32
    %c0_i32_1 = arith.constant 0 : i32
    return %c0_i32, %c0_i32_0 : i32, i32
  }
  func.func @transform_5(%arg0: i32) -> (i32, i32, i32) {
    %c0_i32 = arith.constant 0 : i32
    %c0_i32_0 = arith.constant 0 : i32
    %c0_i32_1 = arith.constant 0 : i32
    %c0_i32_2 = arith.constant 0 : i32
    return %c0_i32, %c0_i32_0, %c0_i32_1 : i32, i32, i32
  }
  func.func @transform_6(%arg0: i32) -> (i32, i32, i32) {
    %c0_i32 = arith.constant 0 : i32
    %c0_i32_0 = arith.constant 0 : i32
    %c0_i32_1 = arith.constant 0 : i32
    %c0_i32_2 = arith.constant 0 : i32
    return %c0_i32, %c0_i32_0, %c0_i32_1 : i32, i32, i32
  }
  func.func @transform_7(%arg0: i32) -> (i32, i32, i32) {
    %c0_i32 = arith.constant 0 : i32
    %c0_i32_0 = arith.constant 0 : i32
    %c0_i32_1 = arith.constant 0 : i32
    %c0_i32_2 = arith.constant 0 : i32
    return %c0_i32, %c0_i32_0, %c0_i32_1 : i32, i32, i32
  }
  func.func @transform_8(%arg0: i32) -> (i32, i32) {
    %c0_i32 = arith.constant 0 : i32
    %c0_i32_0 = arith.constant 0 : i32
    return %arg0, %c0_i32 : i32, i32
  }
}

</mosaic_0001>

<bundles_post_ra>
// kernel: resnet_conv2d_forward.1
= control target key start
LH: loop header
LB: loop body
LE: loop exit
PB: predicated region body
PF: predicated region fallthrough
CT: control target
= control target key end

     0   :  { %13 = vsyncpa [#allocation3], 0  ;;  %s4362_s0 = inlined_call_operand.vmem [shape: f32[32,64], index: 0, kind: input, shape index: {}]   ;;  %s4363_s1 = inlined_call_operand.vmem [shape: f32[32,2], index: 1, kind: input, shape index: {}]   ;;  %s4364_s2 = inlined_call_operand.hbm [shape: bf16[64,512], index: 2, kind: input, shape index: {}]   ;;  %s4365_s3 = inlined_call_operand.vmem [shape: f32[7,512], index: 3, kind: input, shape index: {}]   ;;  %s4366_s4 = inlined_call_operand.vmem [shape: f32[12,128], index: 4, kind: input, shape index: {}]   ;;  %s4367_s5 = inlined_call_operand.vmem [shape: bf16[2,512,128], index: 5, kind: input, shape index: {}]   ;;  %s4368_s6 = inlined_call_operand.hbm [shape: bf16[2,128,512], index: 6, kind: input, shape index: {}]   ;;  %s4369_s7 = inlined_call_operand.hbm [shape: bf16[2,384,128], index: 7, kind: input, shape index: {}]   ;;  %s4370_s8 = inlined_call_operand.vmem [shape: f32[32,512], index: 8, kind: output, shape index: {}]  }
   0x1   :  { %14 = vsyncpa [#allocation5], 0  ;;  %s42_s29 = sshll.u32 %s4368_s6, 4  ;;  %s3573_s30 = smov [#allocation4]   ;;  %s43_s29 = int_to_ptr.hbm [resolvable:$true] %s42_s29 }
   0x2   :  { %s44_s9 = sshll.u32 %s3573_s30, 4  ;;  %s23_s12 = sshll.u32 %s4364_s2, 4  ;;  %s45_s9 = int_to_ptr.vmem [resolvable:$true] %s44_s9  ;;  %s24_s12 = int_to_ptr.hbm [resolvable:$true] %s23_s12 }
   0x3   :  { %s3574_s13 = smov 256   ;;  %s3575_s14 = smov 16  }
   0x4   :  { %50 = dma.hbm_to_vmem [thread:$0]  %s43_s29, 8192, %s45_s9, [#allocation5], %s3574_s13, %s3574_s13, %s3575_s14  }
   0x5   :  { %s3576_s15 = smov [#allocation2]   ;;  %s55_s19 = sshll.u32 %s4369_s7, 4  ;;  %s56_s19 = int_to_ptr.hbm [resolvable:$true] %s55_s19 }
   0x6   :  { %s25_s16 = sshll.u32 %s3576_s15, 4  ;;  %s3577_s6 = smov [#allocation6]   ;;  %s26_s16 = int_to_ptr.vmem [resolvable:$true] %s25_s16 }
   0x7   :  { %31 = dma.hbm_to_vmem [thread:$0]  %s24_s12, 2048, %s26_s16, [#allocation3], %s3574_s13, %s3574_s13, %s3575_s14  }
   0x8   :  { %s57_s20 = sshll.u32 %s3577_s6, 4  ;;  %s3578_s21 = smov 64   ;;  %s58_s20 = int_to_ptr.vmem [resolvable:$true] %s57_s20 }
   0x9   :  { %s3579_s22 = smov 4  }
   0xa   :  { %63 = dma.hbm_to_vmem [thread:$0]  %s56_s19, 6144, %s58_s20, [#allocation5], %s3578_s21, %s3578_s21, %s3579_s22  }
   0xb   :  { %3569 = dma.done.wait [#allocation3], 2048  }
   0xc   :  { %3570 = vsyncadd [#allocation3], 4294965248 }
   0xd   :  { %3571 = dma.done.wait [#allocation5], 14336  }
   0xe   :  { %3572 = vsyncadd [#allocation5], 4294952960  ;;  %v2467_v0 = vld [vmem:[#allocation2 + $0x60] sm:$0xf]  ;;  %v3277_v1 = vld [vmem:[#allocation2 + $0x6c] sm:$0xf0] }
   0xf   :  { %v3275_v2 = vld [vmem:[#allocation2 + $0x64] sm:$0xf]  ;;  %v2468_v3 = vor.u32 %v3277_v1, %v2467_v0  ;;  %v2469_v4 = vld [vmem:[#allocation2 + $0x70] sm:$0xf0]  ;;  %v2475_v5 = vld [vmem:[#allocation2 + $0x68] sm:$0xf] }
  0x10   :  { %v3278_v6 = vld [vmem:[#allocation2 + $0x74] sm:$0xf0]  ;;  %v2472_v7 = vor.u32 %v3275_v2, %v2469_v4  ;;  %v3276_v9 = vld [vmem:[#allocation2 + $0x6c] sm:$0xf]  ;;  %v2477_v10 = vld [vmem:[#allocation2 + $0x78] sm:$0xf0] }
  0x11   :  { %v2476_v8 = vor.u32 %v3278_v6, %v2475_v5  ;;  %v2451_v11 = vld [vmem:[#allocation2 + $0x40] sm:$0xf]  ;;  %204 = vmatpush.bf16.msra.mxu0 %v2468_v3  ;;  %v2480_v12 = vor.u32 %v3276_v9, %v2477_v10  ;;  %v3273_v13 = vld [vmem:[#allocation2 + $0x4c] sm:$0xf0]  ;;  %v3271_v14 = vld [vmem:[#allocation2 + $0x44] sm:$0xf] }
  0x12   :  { %v2453_v15 = vld [vmem:[#allocation2 + $0x50] sm:$0xf0]  ;;  %223 = vmatpush.bf16.msra.mxu1 %v2472_v7  ;;  %v2452_v16 = vor.u32 %v3273_v13, %v2451_v11  ;;  %v2459_v18 = vld [vmem:[#allocation2 + $0x48] sm:$0xf]  ;;  %v3274_v19 = vld [vmem:[#allocation2 + $0x54] sm:$0xf0] }
  0x13   :  { %242 = vmatpush.bf16.msra.mxu2 %v2476_v8  ;;  %v2456_v17 = vor.u32 %v3271_v14, %v2453_v15  ;;  %v3272_v20 = vld [vmem:[#allocation2 + $0x4c] sm:$0xf]  ;;  %261 = vmatpush.bf16.msra.mxu3 %v2480_v12  ;;  %v2460_v21 = vor.u32 %v3274_v19, %v2459_v18  ;;  %v2461_v22 = vld [vmem:[#allocation2 + $0x58] sm:$0xf0]  ;;  %v2435_v23 = vld [vmem:[#allocation2 + $0x20] sm:$0xf] }
  0x14   :  { %v3269_v24 = vld [vmem:[#allocation2 + $0x2c] sm:$0xf0]  ;;  %v2464_v25 = vor.u32 %v3272_v20, %v2461_v22  ;;  %v3267_v26 = vld [vmem:[#allocation2 + $0x24] sm:$0xf]  ;;  %v2437_v27 = vld [vmem:[#allocation2 + $0x30] sm:$0xf0] }
  0x15   :  { %v2443_v28 = vld [vmem:[#allocation2 + $0x28] sm:$0xf]  ;;  %205 = vmatpush.bf16.msra.mxu0 %v2452_v16  ;;  %v2436_v29 = vor.u32 %v3269_v24, %v2435_v23  ;;  %v3270_v30 = vld [vmem:[#allocation2 + $0x34] sm:$0xf0]  ;;  %v3268_v31 = vld [vmem:[#allocation2 + $0x2c] sm:$0xf]  ;;  %v2440_v33 = vor.u32 %v3267_v26, %v2437_v27 }
  0x16   :  { %v2445_v32 = vld [vmem:[#allocation2 + $0x38] sm:$0xf0]  ;;  %224 = vmatpush.bf16.msra.mxu1 %v2456_v17  ;;  %v2444_v34 = vor.u32 %v3270_v30, %v2443_v28  ;;  %v2419_v35 = vld [vmem:[#allocation2] sm:$0xf]  ;;  %v3265_v36 = vld [vmem:[#allocation2 + $0xc] sm:$0xf0] }
  0x17   :  { %243 = vmatpush.bf16.msra.mxu2 %v2460_v21  ;;  %v3263_v37 = vld [vmem:[#allocation2 + $0x4] sm:$0xf]  ;;  %262 = vmatpush.bf16.msra.mxu3 %v2464_v25  ;;  %v2448_v38 = vor.u32 %v3268_v31, %v2445_v32  ;;  %v2421_v39 = vld [vmem:[#allocation2 + $0x10] sm:$0xf0]  ;;  %v2427_v40 = vld [vmem:[#allocation2 + $0x8] sm:$0xf]  ;;  %v2420_v44 = vor.u32 %v3265_v36, %v2419_v35 }
  0x18   :  { %v3266_v41 = vld [vmem:[#allocation2 + $0x14] sm:$0xf0]  ;;  %v3264_v42 = vld [vmem:[#allocation2 + $0xc] sm:$0xf]  ;;  %v2429_v43 = vld [vmem:[#allocation2 + $0x18] sm:$0xf0]  ;;  %v2424_v47 = vor.u32 %v3263_v37, %v2421_v39 }
  0x19   :  { %206 = vmatpush.bf16.msra.mxu0 %v2436_v29  ;;  %v81_v45 = vld [vmem:[%s4362_s0] sm:$0xff]  ;;  %v82_v46 = vld [vmem:[%s4362_s0 + $0x8] sm:$0xff]  ;;  %v2428_v48 = vor.u32 %v3266_v41, %v2427_v40  ;;  %v2432_v49 = vor.u32 %v3264_v42, %v2429_v43  ;;  %v3286_v50 = vld [vmem:[%s4367_s5 + $0x38] sm:$0xff]  ;;  %vm193_vm0 = vcmask 523264  }
  0x1a   :  { %225 = vmatpush.bf16.msra.mxu1 %v2440_v33  ;;  %v101_v51 = vpack.c.bf16 %v82_v46, %v81_v45  ;;  %v3294_v52 = vld [vmem:[%s4367_s5 + $0x78] sm:$0xff]  ;;  %v3285_v53 = vld [vmem:[%s4367_s5 + $0x30] sm:$0xff]  ;;  %v3284_v58 = vld [vmem:[%s4367_s5 + $0x28] sm:$0xff] }
  0x1b   :  { %244 = vmatpush.bf16.msra.mxu2 %v2444_v34  ;;  %263 = vmatpush.bf16.msra.mxu3 %v2448_v38  ;;  %v3302_v54 = vld [vmem:[%s4367_s5 + $0xb8] sm:$0xff]  ;;  %v3293_v55 = vld [vmem:[%s4367_s5 + $0x70] sm:$0xff]  ;;  %v3292_v60 = vld [vmem:[%s4367_s5 + $0x68] sm:$0xff] }
  0x1c   :  { %v3310_v56 = vld [vmem:[%s4367_s5 + $0xf8] sm:$0xff]  ;;  %v3301_v57 = vld [vmem:[%s4367_s5 + $0xb0] sm:$0xff]  ;;  %v3283_v0 = vld [vmem:[%s4367_s5 + $0x20] sm:$0xff] }
  0x1d   :  { %207 = vmatpush.bf16.msra.mxu0 %v2420_v44  ;;  %v3309_v59 = vld [vmem:[%s4367_s5 + $0xf0] sm:$0xff]  ;;  %v84_v62 = vld [vmem:[%s4362_s0 + $0x18] sm:$0xff]  ;;  %v3291_v1 = vld [vmem:[%s4367_s5 + $0x60] sm:$0xff] }
  0x1e   :  { %226 = vmatpush.bf16.msra.mxu1 %v2424_v47  ;;  %v83_v61 = vld [vmem:[%s4362_s0 + $0x10] sm:$0xff]  ;;  %v3300_v2 = vld [vmem:[%s4367_s5 + $0xa8] sm:$0xff]  ;;  %v3282_v4 = vld [vmem:[%s4367_s5 + $0x18] sm:$0xff] }
  0x1f   :  { %245 = vmatpush.bf16.msra.mxu2 %v2428_v48  ;;  %264 = vmatpush.bf16.msra.mxu3 %v2432_v49  ;;  %v102_v63 = vpack.c.bf16 %v84_v62, %v83_v61  ;;  %v3308_v3 = vld [vmem:[%s4367_s5 + $0xe8] sm:$0xff]  ;;  %v3290_v5 = vld [vmem:[%s4367_s5 + $0x58] sm:$0xff]  ;;  %v3299_v6 = vld [vmem:[%s4367_s5 + $0xa0] sm:$0xff] }
  0x20   :  { %2481 = vmatmul.msk.bf16.vlgmr.msra.gmra.mxu0 %vm193_vm0, %v101_v51  ;;  %v3307_v7 = vld [vmem:[%s4367_s5 + $0xe0] sm:$0xff]  ;;  %v3281_v8 = vld [vmem:[%s4367_s5 + $0x10] sm:$0xff]  ;;  %v3298_v10 = vld [vmem:[%s4367_s5 + $0x98] sm:$0xff] }
  0x21   :  { %612 = vmatpush.bf16.msrb.mxu0 %v3286_v50  ;;  %2483 = vmatmul.msk.bf16.vlgmr.msra.gmra.mxu1 %vm193_vm0, %v101_v51  ;;  %v3289_v9 = vld [vmem:[%s4367_s5 + $0x50] sm:$0xff]  ;;  %v3306_v11 = vld [vmem:[%s4367_s5 + $0xd8] sm:$0xff]  ;;  %v3280_v12 = vld [vmem:[%s4367_s5 + $0x8] sm:$0xff] }
  0x22   :  { %631 = vmatpush.bf16.msrb.mxu1 %v3294_v52  ;;  %2485 = vmatmul.msk.bf16.vlgmr.msra.gmra.mxu2 %vm193_vm0, %v101_v51  ;;  %v3288_v13 = vld [vmem:[%s4367_s5 + $0x48] sm:$0xff]  ;;  %v3297_v14 = vld [vmem:[%s4367_s5 + $0x90] sm:$0xff]  ;;  %v3279_v16 = vld [vmem:[%s4367_s5] sm:$0xff] }
  0x23   :  { %2487 = vmatmul.msk.bf16.vlgmr.msra.gmra.mxu3 %vm193_vm0, %v101_v51  ;;  %650 = vmatpush.bf16.msrb.mxu2 %v3302_v54  ;;  %v3305_v15 = vld [vmem:[%s4367_s5 + $0xd0] sm:$0xff]  ;;  %v3287_v17 = vld [vmem:[%s4367_s5 + $0x40] sm:$0xff]  ;;  %v3296_v18 = vld [vmem:[%s4367_s5 + $0x88] sm:$0xff]  ;;  %v3580_v54 = vmov 1  }
  0x24   :  { %669 = vmatpush.bf16.msrb.mxu3 %v3310_v56  ;;  %v3304_v19 = vld [vmem:[%s4367_s5 + $0xc8] sm:$0xff]  ;;  %v3295_v20 = vld [vmem:[%s4367_s5 + $0x80] sm:$0xff]  ;;  %3480 = vset.pattern.permute.xlu0 %v3580_v54  ;;  %v79_v62 = vld [vmem:[%s4363_s1 + $0x10] sm:$0xff] }
  0x25   :  { %613 = vmatpush.bf16.msrb.mxu0 %v3285_v53  ;;  %v3303_v21 = vld [vmem:[%s4367_s5 + $0xc0] sm:$0xff]  ;;  %3482 = vset.pattern.permute.xlu2 %v3580_v54 }
  0x26   :  { %632 = vmatpush.bf16.msrb.mxu1 %v3293_v55  ;;  %v103_v22 = vld [vmem:[%s4365_s3] ss:$8 sm:$0xf]  ;;  %v2489_v26 = vld [vmem:[%s4365_s3 + $0x1] ss:$8 sm:$0xf]  ;;  %758 = vperm.xlu2 %3482, %v79_v62  }
  0x27   :  { %651 = vmatpush.bf16.msrb.mxu2 %v3301_v57  ;;  %v3755_v23 = vperm.slane %v103_v22, 0  ;;  %v3757_v24 = vperm.slane %v103_v22, 1  ;;  %v3765_v28 = vperm.slane %v2489_v26, 0  ;;  %v3770_v31 = vperm.slane %v2489_v26, 1  ;;  %v77_v52 = vld [vmem:[%s4363_s1] sm:$0xff] }
  0x28   :  { %670 = vmatpush.bf16.msrb.mxu3 %v3309_v59  ;;  %v2490_v32 = vld [vmem:[%s4365_s3 + $0x2] ss:$8 sm:$0xf]  ;;  %v3783_v37 = vperm.slane %v103_v22, 2  ;;  %v3785_v39 = vperm.slane %v103_v22, 3  ;;  %v3788_v43 = vperm.slane %v2489_v26, 2  ;;  %750 = vperm.xlu0 %3480, %v77_v52  }
  0x29   :  { %614 = vmatpush.bf16.msrb.mxu0 %v3284_v58  ;;  %v3777_v34 = vperm.slane %v2490_v32, 0  ;;  %v3781_v36 = vperm.slane %v2490_v32, 1  ;;  %v3797_v48 = vperm.slane %v2489_v26, 3  ;;  %v3581_v55 = vmov 0   ;;  %v80_v26 = vld [vmem:[%s4363_s1 + $0x18] sm:$0xff] }
  0x2a   :  { %633 = vmatpush.bf16.msrb.mxu1 %v3292_v60  ;;  %3481 = vset.pattern.permute.xlu1 %v3581_v55  ;;  %v3817_v60 = vperm.slane %v2490_v32, 2 }
  0x2b   :  { %652 = vmatpush.bf16.msrb.mxu2 %v3300_v2  ;;  %718 = vperm.xlu1 %3481, %v77_v52  }
  0x2c   :  { %671 = vmatpush.bf16.msrb.mxu3 %v3308_v3 }
  0x2d   :  { %615 = vmatpush.bf16.msrb.mxu0 %v3283_v0  ;;  %v3826_v0 = vperm.slane %v2490_v32, 3 }
  0x2e   :  { %634 = vmatpush.bf16.msrb.mxu1 %v3291_v1  ;;  %762 = vperm.xlu2 %3482, %v80_v26  }
  0x2f   :  { %653 = vmatpush.bf16.msrb.mxu2 %v3299_v6 }
  0x30   :  { %2482 = vmatmul.msk.bf16.gmra.mxu0 %vm193_vm0, %v102_v63  ;;  %672 = vmatpush.bf16.msrb.mxu3 %v3307_v7 }
  0x31   :  { %2484 = vmatmul.msk.bf16.gmra.mxu1 %vm193_vm0, %v102_v63  ;;  %616 = vmatpush.bf16.msrb.mxu0 %v3282_v4 }
  0x32   :  { %2486 = vmatmul.msk.bf16.gmra.mxu2 %vm193_vm0, %v102_v63  ;;  %635 = vmatpush.bf16.msrb.mxu1 %v3290_v5 }
  0x33   :  { %2488 = vmatmul.msk.bf16.gmra.mxu3 %vm193_vm0, %v102_v63  ;;  %654 = vmatpush.bf16.msrb.mxu2 %v3298_v10 }
  0x34   :  { %673 = vmatpush.bf16.msrb.mxu3 %v3306_v11 }
  0x35   :  { %617 = vmatpush.bf16.msrb.mxu0 %v3281_v8 }
  0x36   :  { %636 = vmatpush.bf16.msrb.mxu1 %v3289_v9 }
  0x37   :  { %655 = vmatpush.bf16.msrb.mxu2 %v3297_v14 }
  0x38   :  { %674 = vmatpush.bf16.msrb.mxu3 %v3305_v15  ;;  %v78_v15 = vld [vmem:[%s4363_s1 + $0x8] sm:$0xff] }
  0x39   :  { %618 = vmatpush.bf16.msrb.mxu0 %v3280_v12  ;;  %754 = vperm.xlu0 %3480, %v78_v15  }
  0x3a   :  { %637 = vmatpush.bf16.msrb.mxu1 %v3288_v13  ;;  %723 = vperm.xlu1 %3481, %v78_v15  }
  0x3b   :  { %656 = vmatpush.bf16.msrb.mxu2 %v3296_v18 }
  0x3c   :  { %675 = vmatpush.bf16.msrb.mxu3 %v3304_v19 }
  0x3d   :  { %619 = vmatpush.bf16.msrb.mxu0 %v3279_v16 }
  0x3e   :  { %638 = vmatpush.bf16.msrb.mxu1 %v3287_v17 }
  0x3f   :  { %657 = vmatpush.bf16.msrb.mxu2 %v3295_v20 }
  0x40   :  { %676 = vmatpush.bf16.msrb.mxu3 %v3303_v21 }
  0x41   :  { %3483 = vset.pattern.permute.xlu0 %v3581_v55 }
  0x42   :  { %733 = vperm.xlu1 %3481, %v80_v26   ;;  %728 = vperm.xlu0 %3483, %v79_v62   ;;  %v3317_v26 = vld [vmem:[#allocation6 + $0x30] sm:$0xff] }
  0x4a   :  { %3484 = vset.pattern.permute.xlu0 %v3580_v54  ;;  %v3321_v54 = vld [vmem:[#allocation6 + $0x50] sm:$0xff] }
  0x9d   :  { %v209_v25 = vpop.f32.mrf.mxu0 }
  0x9e   :  { %v3763_v27 = vadd.f32 %v209_v25, %v3755_v23  ;;  %v228_v29 = vpop.f32.mrf.mxu1 }
  0x9f   :  { %v3768_v30 = vadd.f32 %v228_v29, %v3757_v24 }
  0xa0   :  { %v289_v33 = vmul.f32 %v3765_v28, %v3763_v27 }
  0xa1   :  { %v290_v35 = vmul.f32 %v3770_v31, %v3768_v30 }
  0xa2   :  { %v314_v42 = vadd.f32 %v3777_v34, %v289_v33 }
  0xa3   :  { %v315_v46 = vadd.f32 %v3781_v36, %v290_v35 }
  0xa4   :  { %v330_v56 = vmax.f32 %v314_v42, 0.0 }
  0xa5   :  { %v247_v38 = vpop.f32.mrf.mxu2  ;;  %v211_v41 = vpop.f32.mrf.mxu0  ;;  %v331_v58 = vmax.f32 %v315_v46, 0.0 }
  0xa6   :  { %v266_v40 = vpop.f32.mrf.mxu3  ;;  %v3791_v44 = vadd.f32 %v211_v41, %v3755_v23  ;;  %v230_v45 = vpop.f32.mrf.mxu1  ;;  %v3795_v47 = vadd.f32 %v247_v38, %v3783_v37 }
  0xa7   :  { %v3800_v49 = vadd.f32 %v230_v45, %v3757_v24  ;;  %v3803_v50 = vadd.f32 %v266_v40, %v3785_v39 }
  0xa8   :  { %v293_v51 = vmul.f32 %v3765_v28, %v3791_v44  ;;  %v291_v59 = vmul.f32 %v3788_v43, %v3795_v47 }
  0xa9   :  { %v294_v53 = vmul.f32 %v3770_v31, %v3800_v49  ;;  %v292_v63 = vmul.f32 %v3797_v48, %v3803_v50 }
  0xaa   :  { %v318_v57 = vadd.f32 %v3777_v34, %v293_v51  ;;  %v316_v11 = vadd.f32 %v3817_v60, %v291_v59 }
  0xab   :  { %v319_v61 = vadd.f32 %v3781_v36, %v294_v53  ;;  %v317_v16 = vadd.f32 %v3826_v0, %v292_v63 }
  0xac   :  { %v334_v2 = vmax.f32 %v318_v57, 0.0  ;;  %v332_v21 = vmax.f32 %v316_v11, 0.0 }
  0xad   :  { %v249_v1 = vpop.f32.mrf.mxu2  ;;  %v214_v5 = vpop.f32.mrf.mxu0  ;;  %v335_v6 = vmax.f32 %v319_v61, 0.0  ;;  %v333_v29 = vmax.f32 %v317_v16, 0.0 }
  0xae   :  { %v3829_v3 = vadd.f32 %v249_v1, %v3783_v37  ;;  %v268_v4 = vpop.f32.mrf.mxu3  ;;  %v3835_v8 = vadd.f32 %v214_v5, %v3755_v23  ;;  %v233_v9 = vpop.f32.mrf.mxu1  ;;  %v410_v10 = vpack.c.bf16 %v334_v2, %v330_v56 }
  0xaf   :  { %v3832_v7 = vadd.f32 %v268_v4, %v3785_v39  ;;  %v3841_v13 = vadd.f32 %v233_v9, %v3757_v24  ;;  %v411_v14 = vpack.c.bf16 %v335_v6, %v331_v58 }
  0xb0   :  { %v295_v12 = vmul.f32 %v3788_v43, %v3829_v3  ;;  %620 = vmatmul.bf16.vlgmr.msrb.gmra.mxu0 %v410_v10  ;;  %v297_v20 = vmul.f32 %v3765_v28, %v3835_v8 }
  0xb1   :  { %v296_v17 = vmul.f32 %v3797_v48, %v3832_v7  ;;  %639 = vmatmul.bf16.vlgmr.msrb.gmra.mxu1 %v411_v14  ;;  %v298_v22 = vmul.f32 %v3770_v31, %v3841_v13 }
  0xb2   :  { %v320_v18 = vadd.f32 %v3817_v60, %v295_v12  ;;  %v322_v46 = vadd.f32 %v3777_v34, %v297_v20  ;;  %v3333_v20 = vld [vmem:[#allocation6 + $0xb0] sm:$0xff] }
  0xb3   :  { %v321_v19 = vadd.f32 %v3826_v0, %v296_v17  ;;  %v323_v53 = vadd.f32 %v3781_v36, %v298_v22  ;;  %v3326_v17 = vld [vmem:[#allocation6 + $0x78] sm:$0xff]  ;;  %v3332_v22 = vld [vmem:[#allocation6 + $0xa8] sm:$0xff] }
  0xb4   :  { %v336_v25 = vmax.f32 %v320_v18, 0.0  ;;  %v338_v59 = vmax.f32 %v322_v46, 0.0  ;;  %987 = vmatpush.bf16.msra.mxu1 %v3326_v17  ;;  %v3324_v18 = vld [vmem:[#allocation6 + $0x68] sm:$0xff] }
  0xb5   :  { %v252_v32 = vpop.f32.mrf.mxu2  ;;  %v337_v33 = vmax.f32 %v321_v19, 0.0  ;;  %v216_v38 = vpop.f32.mrf.mxu0  ;;  %v339_v63 = vmax.f32 %v323_v53, 0.0  ;;  %v3323_v19 = vld [vmem:[#allocation6 + $0x60] sm:$0xff]  ;;  %v3314_v53 = vld [vmem:[#allocation6 + $0x18] sm:$0xff] }
  0xb6   :  { %v271_v35 = vpop.f32.mrf.mxu3  ;;  %v412_v40 = vpack.c.bf16 %v336_v25, %v332_v21  ;;  %v3859_v41 = vadd.f32 %v216_v38, %v3755_v23  ;;  %v235_v42 = vpop.f32.mrf.mxu1  ;;  %v3863_v51 = vadd.f32 %v252_v32, %v3783_v37  ;;  %v3318_v21 = vld [vmem:[#allocation6 + $0x38] sm:$0xff]  ;;  %v3320_v25 = vld [vmem:[#allocation6 + $0x48] sm:$0xff]  ;;  %v3319_v32 = vld [vmem:[#allocation6 + $0x40] sm:$0xff] }
  0xb7   :  { %v413_v45 = vpack.c.bf16 %v337_v33, %v333_v29  ;;  %v3866_v52 = vadd.f32 %v235_v42, %v3757_v24  ;;  %v3870_v56 = vadd.f32 %v271_v35, %v3785_v39  ;;  %968 = vmatpush.bf16.msra.mxu0 %v3318_v21  ;;  %v3331_v29 = vld [vmem:[#allocation6 + $0xa0] sm:$0xff]  ;;  %v3316_v33 = vld [vmem:[#allocation6 + $0x28] sm:$0xff]  ;;  %v3330_v35 = vld [vmem:[#allocation6 + $0x98] sm:$0xff] }
  0xb8   :  { %658 = vmatmul.bf16.vlgmr.msrb.gmra.mxu2 %v412_v40  ;;  %v301_v23 = vmul.f32 %v3765_v28, %v3859_v41  ;;  %v299_v24 = vmul.f32 %v3788_v43, %v3863_v51  ;;  %v3315_v40 = vld [vmem:[#allocation6 + $0x20] sm:$0xff]  ;;  %v3329_v42 = vld [vmem:[#allocation6 + $0x90] sm:$0xff] }
  0xb9   :  { %677 = vmatmul.bf16.vlgmr.msrb.gmra.mxu3 %v413_v45  ;;  %v302_v57 = vmul.f32 %v3770_v31, %v3866_v52  ;;  %v300_v28 = vmul.f32 %v3797_v48, %v3870_v56  ;;  %v3485_v45 = vld [vmem:[%s4366_s4] ss:$0 sm:$0xff] }
  0xba   :  { %v326_v58 = vadd.f32 %v3777_v34, %v301_v23  ;;  %v324_v62 = vadd.f32 %v3817_v60, %v299_v24  ;;  %v3328_v23 = vld [vmem:[#allocation6 + $0x88] sm:$0xff]  ;;  %v3327_v24 = vld [vmem:[#allocation6 + $0x80] sm:$0xff] }
  0xbb   :  { %v327_v61 = vadd.f32 %v3781_v36, %v302_v57  ;;  %v325_v10 = vadd.f32 %v3826_v0, %v300_v28  ;;  %969 = vmatpush.bf16.msra.mxu0 %v3317_v26  ;;  %v3907_v26 = vpop.permute.xlu0 %750 }
  0xbc   :  { %v342_v2 = vmax.f32 %v326_v58, 0.0 }
  0xbd   :  { %v254_v1 = vpop.f32.mrf.mxu2  ;;  %v343_v4 = vmax.f32 %v327_v61, 0.0  ;;  %v341_v14 = vmax.f32 %v325_v10, 0.0 }
  0xbe   :  { %v3884_v31 = vadd.f32 %v254_v1, %v3783_v37  ;;  %v273_v34 = vpop.f32.mrf.mxu3  ;;  %v414_v5 = vpack.c.bf16 %v342_v2, %v338_v59  ;;  %v3313_v59 = vld [vmem:[#allocation6 + $0x10] sm:$0xff] }
  0xbf   :  { %v3887_v55 = vadd.f32 %v273_v34, %v3785_v39  ;;  %v415_v36 = vpack.c.bf16 %v343_v4, %v339_v63  ;;  %v340_v39 = vmax.f32 %v324_v62, 0.0  ;;  %970 = vmatpush.bf16.msra.mxu0 %v3316_v33  ;;  %v3312_v34 = vld [vmem:[#allocation6 + $0x8] sm:$0xff]  ;;  %v3311_v62 = vld [vmem:[#allocation6] sm:$0xff] }
  0xc0   :  { %v303_v6 = vmul.f32 %v3788_v43, %v3884_v31  ;;  %625 = vmatmul.bf16.gmra.mxu0 %v414_v5 }
  0xc1   :  { %v304_v9 = vmul.f32 %v3797_v48, %v3887_v55  ;;  %644 = vmatmul.bf16.gmra.mxu1 %v415_v36  ;;  %v3325_v48 = vld [vmem:[#allocation6 + $0x70] sm:$0xff] }
  0xc2   :  { %v328_v37 = vadd.f32 %v3817_v60, %v303_v6  ;;  %988 = vmatpush.bf16.msra.mxu1 %v3325_v48  ;;  %v3334_v60 = vld [vmem:[#allocation6 + $0xb8] sm:$0xff]  ;;  %v3486_v6 = vld [vmem:[%s4366_s4 + $0x1] ss:$0 sm:$0xff] }
  0xc3   :  { %v329_v11 = vadd.f32 %v3826_v0, %v304_v9  ;;  %1006 = vmatpush.bf16.msra.mxu2 %v3334_v60  ;;  %v3322_v0 = vld [vmem:[#allocation6 + $0x58] sm:$0xff]  ;;  %971 = vmatpush.bf16.msra.mxu0 %v3315_v40  ;;  %v709_v60 = vlaneseq }
  0xc4   :  { %v344_v12 = vmax.f32 %v328_v37, 0.0 }
  0xc5   :  { %v345_v43 = vmax.f32 %v329_v11, 0.0  ;;  %v3487_v11 = vld [vmem:[%s4366_s4 + $0x2] ss:$0 sm:$0xff]  ;;  %v3909_v33 = vshrl.u32 %v709_v60, 7 }
  0xc6   :  { %v416_v15 = vpack.c.bf16 %v344_v12, %v340_v39  ;;  %989 = vmatpush.bf16.msra.mxu1 %v3324_v18 }
  0xc7   :  { %v417_v16 = vpack.c.bf16 %v345_v43, %v341_v14  ;;  %1007 = vmatpush.bf16.msra.mxu2 %v3333_v20  ;;  %972 = vmatpush.bf16.msra.mxu0 %v3314_v53  ;;  %vm744_vm1 = vcmp.lt.s32.totalorder %v3909_v33, 7  ;;  %vm711_vm2 = vcmp.lt.s32.totalorder %v3909_v33, 1 }
  0xc8   :  { %663 = vmatmul.bf16.gmra.mxu2 %v416_v15 }
  0xc9   :  { %682 = vmatmul.bf16.gmra.mxu3 %v417_v16 }
  0xca   :  { %990 = vmatpush.bf16.msra.mxu1 %v3323_v19 }
  0xcb   :  { %1008 = vmatpush.bf16.msra.mxu2 %v3332_v22  ;;  %973 = vmatpush.bf16.msra.mxu0 %v3313_v59 }
  0xce   :  { %991 = vmatpush.bf16.msra.mxu1 %v3322_v0 }
  0xcf   :  { %1009 = vmatpush.bf16.msra.mxu2 %v3331_v29  ;;  %974 = vmatpush.bf16.msra.mxu0 %v3312_v34 }
  0xd2   :  { %992 = vmatpush.bf16.msra.mxu1 %v3321_v54 }
  0xd3   :  { %1010 = vmatpush.bf16.msra.mxu2 %v3330_v35  ;;  %975 = vmatpush.bf16.msra.mxu0 %v3311_v62  ;;  %v3922_v62 = vpop.permute.xlu2 %758 }
  0xd6   :  { %993 = vmatpush.bf16.msra.mxu1 %v3320_v25 }
  0xd7   :  { %1011 = vmatpush.bf16.msra.mxu2 %v3329_v42 }
  0xda   :  { %994 = vmatpush.bf16.msra.mxu1 %v3319_v32 }
  0xdb   :  { %1012 = vmatpush.bf16.msra.mxu2 %v3328_v23  ;;  %v3912_v23 = vpop.permute.xlu1 %718 }
  0xdf   :  { %1013 = vmatpush.bf16.msra.mxu2 %v3327_v24 }
 0x12d   :  { %v621_v38 = vpop.f32.mrf.mxu0 }
 0x12e   :  { %v640_v46 = vpop.f32.mrf.mxu1  ;;  %v622_v57 = vadd.f32 %v3485_v45, %v621_v38 }
 0x130   :  { %v641_v61 = vadd.f32 %v640_v46, %v622_v57 }
 0x135   :  { %v623_v58 = vpop.f32.mrf.mxu0 }
 0x136   :  { %v642_v2 = vpop.f32.mrf.mxu1  ;;  %v624_v4 = vadd.f32 %v3485_v45, %v623_v58 }
 0x138   :  { %v643_v9 = vadd.f32 %v642_v2, %v624_v4 }
 0x13b   :  { %v659_v63 = vpop.f32.mrf.mxu2 }
 0x13c   :  { %v660_v28 = vadd.f32 %v659_v63, %v641_v61  ;;  %v678_v1 = vpop.f32.mrf.mxu3 }
 0x13d   :  { %v626_v36 = vpop.f32.mrf.mxu0 }
 0x13e   :  { %v679_v5 = vadd.f32 %v678_v1, %v660_v28  ;;  %v627_v14 = vadd.f32 %v3485_v45, %v626_v36  ;;  %v645_v15 = vpop.f32.mrf.mxu1  ;;  %v3918_v1 = vpop.permute.xlu0 %754 }
 0x140   :  { %v692_v37 = vmul.f32 %v3486_v6, %v679_v5  ;;  %v646_v48 = vadd.f32 %v645_v15, %v627_v14 }
 0x142   :  { %v697_v16 = vadd.f32 %v3487_v11, %v692_v37 }
 0x143   :  { %v661_v10 = vpop.f32.mrf.mxu2 }
 0x144   :  { %v662_v39 = vadd.f32 %v661_v10, %v643_v9  ;;  %v680_v12 = vpop.f32.mrf.mxu3  ;;  %v701_v20 = vmax.f32 %v697_v16, 0.0 }
 0x145   :  { %v628_v19 = vpop.f32.mrf.mxu0 }
 0x146   :  { %v681_v43 = vadd.f32 %v680_v12, %v662_v39  ;;  %v629_v25 = vadd.f32 %v3485_v45, %v628_v19  ;;  %v647_v38 = vpop.f32.mrf.mxu1  ;;  %v740_v57 = vrot.slane %v701_v20, 1  ;;  %v705_v10 = vrot.slane %v701_v20, 7  ;;  %v3927_v12 = vpop.permute.xlu1 %723 }
 0x147   :  { %v3937_v19 = vpop.permute.xlu2 %762 }
 0x148   :  { %v693_v17 = vmul.f32 %v3486_v6, %v681_v43  ;;  %v648_v40 = vadd.f32 %v647_v38, %v629_v25 }
 0x14a   :  { %v698_v18 = vadd.f32 %v3487_v11, %v693_v17 }
 0x14b   :  { %v664_v0 = vpop.f32.mrf.mxu2 }
 0x14c   :  { %v702_v54 = vmax.f32 %v698_v18, 0.0  ;;  %v665_v21 = vadd.f32 %v664_v0, %v646_v48  ;;  %v683_v22 = vpop.f32.mrf.mxu3 }
 0x14e   :  { %v684_v29 = vadd.f32 %v683_v22, %v665_v21  ;;  %v818_v32 = vpack.c.bf16 %v702_v54, %v701_v20  ;;  %v741_v42 = vrot.slane %v702_v54, 1  ;;  %v706_v5 = vrot.slane %v702_v54, 7  ;;  %v3943_v22 = vpop.permute.xlu1 %733 }
 0x150   :  { %v694_v35 = vmul.f32 %v3486_v6, %v684_v29  ;;  %995 = vmatmul.bf16.vlgmr.msra.gmra.mxu1 %v818_v32  ;;  %v747_v24 = vsel %vm744_vm1, %v740_v57, %v741_v42  ;;  %v714_v39 = vsel %vm711_vm2, %v705_v10, %v706_v5  ;;  %v3947_v29 = vpop.permute.xlu0 %728 }
 0x151   :  { %v765_v34 = vmul.f32 %v3907_v26, %v747_v24  ;;  %v737_v15 = vmul.f32 %v3927_v12, %v714_v39 }
 0x152   :  { %v699_v46 = vadd.f32 %v3487_v11, %v694_v35 }
 0x153   :  { %v666_v53 = vpop.f32.mrf.mxu2 }
 0x154   :  { %v703_v58 = vmax.f32 %v699_v46, 0.0  ;;  %v667_v45 = vadd.f32 %v666_v53, %v648_v40  ;;  %v685_v59 = vpop.f32.mrf.mxu3  ;;  %v2830_v40 = vld [vmem:[#allocation4 + $0xe0] sm:$0xf]  ;;  %v3363_v46 = vld [vmem:[#allocation4 + $0xe4] sm:$0xf] }
 0x156   :  { %v742_v61 = vrot.slane %v703_v58, 1  ;;  %v686_v63 = vadd.f32 %v685_v59, %v667_v45  ;;  %v707_v20 = vrot.slane %v703_v58, 7  ;;  %v3366_v45 = vld [vmem:[#allocation4 + $0xf4] sm:$0xf0] }
 0x158   :  { %v746_v28 = vsel %vm744_vm1, %v741_v42, %v742_v61  ;;  %v695_v2 = vmul.f32 %v3486_v6, %v686_v63  ;;  %v713_v25 = vsel %vm711_vm2, %v706_v5, %v707_v20  ;;  %v3365_v42 = vld [vmem:[#allocation4 + $0xec] sm:$0xf0]  ;;  %v2840_v63 = vld [vmem:[#allocation4 + $0xf8] sm:$0xf0] }
 0x159   :  { %v766_v4 = vmul.f32 %v3918_v1, %v746_v28  ;;  %v738_v35 = vmul.f32 %v3947_v29, %v713_v25  ;;  %v2831_v53 = vor.u32 %v3365_v42, %v2830_v40  ;;  %v2784_v42 = vld [vmem:[#allocation4 + $0x90] sm:$0xf0] }
 0x15a   :  { %v700_v36 = vadd.f32 %v3487_v11, %v695_v2  ;;  %v2814_v2 = vld [vmem:[#allocation4 + $0xc0] sm:$0xf] }
 0x15b   :  { %v819_v9 = vpack.c.bf16 %v766_v4, %v765_v34  ;;  %1246 = vmatpush.bf16.msra.mxu3 %v2831_v53  ;;  %v3361_v34 = vld [vmem:[#allocation4 + $0xcc] sm:$0xf0]  ;;  %v3359_v4 = vld [vmem:[#allocation4 + $0xc4] sm:$0xf]  ;;  %v3354_v53 = vld [vmem:[#allocation4 + $0x94] sm:$0xf0] }
 0x15c   :  { %v704_v37 = vmax.f32 %v700_v36, 0.0  ;;  %v2815_v5 = vor.u32 %v3361_v34, %v2814_v2  ;;  %v2816_v36 = vld [vmem:[#allocation4 + $0xd0] sm:$0xf0] }
 0x15d   :  { %1014 = vmatmul.bf16.vlgmr.msra.gmra.mxu2 %v819_v9  ;;  %v2822_v9 = vld [vmem:[#allocation4 + $0xc8] sm:$0xf]  ;;  %v2768_v34 = vld [vmem:[#allocation4 + $0x70] sm:$0xf0] }
 0x15e   :  { %v708_v6 = vrot.slane %v704_v37, 7  ;;  %v821_v14 = vpack.c.bf16 %v704_v37, %v703_v58  ;;  %v743_v43 = vrot.slane %v704_v37, 1  ;;  %v2838_v58 = vld [vmem:[#allocation4 + $0xe8] sm:$0xf]  ;;  %v2819_v37 = vor.u32 %v3359_v4, %v2816_v36  ;;  %v3350_v36 = vld [vmem:[#allocation4 + $0x74] sm:$0xf0] }
 0x15f   :  { %v2839_v24 = vor.u32 %v3366_v45, %v2838_v58  ;;  %1247 = vmatpush.bf16.msra.mxu3 %v2815_v5  ;;  %v3352_v45 = vld [vmem:[#allocation4 + $0x8c] sm:$0xf]  ;;  %v2774_v4 = vld [vmem:[#allocation4 + $0x68] sm:$0xf] }
 0x160   :  { %1000 = vmatmul.bf16.gmra.mxu1 %v821_v14  ;;  %v715_v11 = vsel %vm711_vm2, %v708_v6, %v705_v10  ;;  %v745_v48 = vsel %vm744_vm1, %v742_v61, %v743_v43  ;;  %v748_v18 = vsel %vm744_vm1, %v743_v43, %v740_v57  ;;  %v712_v21 = vsel %vm711_vm2, %v707_v20, %v708_v6  ;;  %v2832_v57 = vld [vmem:[#allocation4 + $0xf0] sm:$0xf0]  ;;  %v3364_v61 = vld [vmem:[#allocation4 + $0xec] sm:$0xf]  ;;  %v3362_v10 = vld [vmem:[#allocation4 + $0xd4] sm:$0xf0] }
 0x161   :  { %v736_v16 = vmul.f32 %v3912_v23, %v715_v11  ;;  %v767_v60 = vmul.f32 %v3922_v62, %v745_v48  ;;  %v768_v0 = vmul.f32 %v3937_v19, %v748_v18  ;;  %v739_v32 = vmul.f32 %v3943_v22, %v712_v21  ;;  %1284 = vmatpush.bf16.msrb.mxu1 %v2839_v24  ;;  %v3360_v6 = vld [vmem:[#allocation4 + $0xcc] sm:$0xf]  ;;  %v2824_v14 = vld [vmem:[#allocation4 + $0xd8] sm:$0xf0]  ;;  %v2798_v11 = vld [vmem:[#allocation4 + $0xa0] sm:$0xf] }
 0x162   :  { %v2835_v59 = vor.u32 %v3363_v46, %v2832_v57  ;;  %v2843_v28 = vor.u32 %v3364_v61, %v2840_v63  ;;  %v2823_v39 = vor.u32 %v3362_v10, %v2822_v9  ;;  %v2827_v43 = vor.u32 %v3360_v6, %v2824_v14  ;;  %v2800_v48 = vld [vmem:[#allocation4 + $0xb0] sm:$0xf0]  ;;  %v2806_v18 = vld [vmem:[#allocation4 + $0xa8] sm:$0xf]  ;;  %v3356_v20 = vld [vmem:[#allocation4 + $0xac] sm:$0xf] }
 0x163   :  { %v817_v17 = vpack.c.bf16 %v737_v15, %v736_v16  ;;  %v822_v54 = vpack.c.bf16 %v768_v0, %v767_v60  ;;  %v820_v38 = vpack.c.bf16 %v739_v32, %v738_v35  ;;  %v3357_v15 = vld [vmem:[#allocation4 + $0xac] sm:$0xf0]  ;;  %v3358_v0 = vld [vmem:[#allocation4 + $0xb4] sm:$0xf0]  ;;  %v2782_v32 = vld [vmem:[#allocation4 + $0x80] sm:$0xf] }
 0x164   :  { %1265 = vmatpush.bf16.msrb.mxu0 %v2835_v59  ;;  %1303 = vmatpush.bf16.msrb.mxu2 %v2843_v28  ;;  %v2799_v16 = vor.u32 %v3357_v15, %v2798_v11  ;;  %v2807_v21 = vor.u32 %v3358_v0, %v2806_v18  ;;  %v3353_v35 = vld [vmem:[#allocation4 + $0x8c] sm:$0xf0]  ;;  %v2790_v46 = vld [vmem:[#allocation4 + $0x88] sm:$0xf]  ;;  %v2792_v59 = vld [vmem:[#allocation4 + $0x98] sm:$0xf0] }
 0x165   :  { %976 = vmatmul.bf16.vlgmr.msra.gmra.mxu0 %v817_v17  ;;  %1285 = vmatpush.bf16.msrb.mxu1 %v2823_v39  ;;  %v3355_v17 = vld [vmem:[#allocation4 + $0xa4] sm:$0xf]  ;;  %v2783_v40 = vor.u32 %v3353_v35, %v2782_v32  ;;  %v2791_v58 = vor.u32 %v3354_v53, %v2790_v46  ;;  %v2795_v24 = vor.u32 %v3352_v45, %v2792_v59  ;;  %v2766_v61 = vld [vmem:[#allocation4 + $0x60] sm:$0xf]  ;;  %v3349_v63 = vld [vmem:[#allocation4 + $0x6c] sm:$0xf0] }
 0x166   :  { %v2803_v60 = vor.u32 %v3355_v17, %v2800_v48  ;;  %1248 = vmatpush.bf16.msra.mxu3 %v2799_v16  ;;  %v3347_v28 = vld [vmem:[#allocation4 + $0x64] sm:$0xf]  ;;  %v2767_v2 = vor.u32 %v3349_v63, %v2766_v61  ;;  %v3348_v9 = vld [vmem:[#allocation4 + $0x6c] sm:$0xf]  ;;  %v2776_v10 = vld [vmem:[#allocation4 + $0x78] sm:$0xf0] }
 0x167   :  { %v2771_v5 = vor.u32 %v3347_v28, %v2768_v34  ;;  %v2779_v39 = vor.u32 %v3348_v9, %v2776_v10  ;;  %v2750_v6 = vld [vmem:[#allocation4 + $0x40] sm:$0xf]  ;;  %v3345_v14 = vld [vmem:[#allocation4 + $0x4c] sm:$0xf0]  ;;  %v2752_v15 = vld [vmem:[#allocation4 + $0x50] sm:$0xf0] }
 0x168   :  { %1266 = vmatpush.bf16.msrb.mxu0 %v2819_v37  ;;  %1304 = vmatpush.bf16.msrb.mxu2 %v2827_v43  ;;  %v2775_v37 = vor.u32 %v3350_v36, %v2774_v4  ;;  %v3343_v43 = vld [vmem:[#allocation4 + $0x44] sm:$0xf]  ;;  %v2751_v11 = vor.u32 %v3345_v14, %v2750_v6  ;;  %v2758_v16 = vld [vmem:[#allocation4 + $0x48] sm:$0xf]  ;;  %v3346_v17 = vld [vmem:[#allocation4 + $0x54] sm:$0xf0] }
 0x169   :  { %1286 = vmatpush.bf16.msrb.mxu1 %v2807_v21  ;;  %v2755_v48 = vor.u32 %v3343_v43, %v2752_v15  ;;  %v2759_v18 = vor.u32 %v3346_v17, %v2758_v16  ;;  %v2760_v0 = vld [vmem:[#allocation4 + $0x58] sm:$0xf0]  ;;  %v3341_v21 = vld [vmem:[#allocation4 + $0x2c] sm:$0xf0]  ;;  %v2736_v35 = vld [vmem:[#allocation4 + $0x30] sm:$0xf0] }
 0x16a   :  { %1249 = vmatpush.bf16.msra.mxu3 %v2783_v40  ;;  %v3342_v40 = vld [vmem:[#allocation4 + $0x34] sm:$0xf0]  ;;  %v3340_v53 = vld [vmem:[#allocation4 + $0x2c] sm:$0xf]  ;;  %v2718_v45 = vld [vmem:[#allocation4] sm:$0xf] }
 0x16b   :  { %v3337_v59 = vld [vmem:[#allocation4 + $0xc] sm:$0xf0]  ;;  %v2720_v63 = vld [vmem:[#allocation4 + $0x10] sm:$0xf0]  ;;  %v2726_v28 = vld [vmem:[#allocation4 + $0x8] sm:$0xf] }
 0x16c   :  { %1267 = vmatpush.bf16.msrb.mxu0 %v2803_v60  ;;  %v3344_v60 = vld [vmem:[#allocation4 + $0x4c] sm:$0xf]  ;;  %v2719_v61 = vor.u32 %v3337_v59, %v2718_v45  ;;  %v2728_v36 = vld [vmem:[#allocation4 + $0x18] sm:$0xf0]  ;;  %v3489_v16 = vld [vmem:[%s4366_s4 + $0x4] ss:$0 sm:$0xff] }
 0x16d   :  { %1019 = vmatmul.bf16.gmra.mxu2 %v822_v54  ;;  %v2808_v54 = vld [vmem:[#allocation4 + $0xb8] sm:$0xf0]  ;;  %1287 = vmatpush.bf16.msrb.mxu1 %v2791_v58 }
 0x16e   :  { %v2811_v25 = vor.u32 %v3356_v20, %v2808_v54  ;;  %1250 = vmatpush.bf16.msra.mxu3 %v2767_v2  ;;  %v2763_v20 = vor.u32 %v3344_v60, %v2760_v0  ;;  %v2734_v54 = vld [vmem:[#allocation4 + $0x20] sm:$0xf]  ;;  %v3338_v2 = vld [vmem:[#allocation4 + $0x14] sm:$0xf0] }
 0x16f   :  { %v2735_v32 = vor.u32 %v3341_v21, %v2734_v54  ;;  %v2727_v4 = vor.u32 %v3338_v2, %v2726_v28  ;;  %v3390_v60 = vld [vmem:[%s4367_s5 + $0x1b8] sm:$0xff]  ;;  %v3381_v21 = vld [vmem:[%s4367_s5 + $0x170] sm:$0xff] }
 0x170   :  { %1305 = vmatpush.bf16.msrb.mxu2 %v2811_v25  ;;  %v3339_v25 = vld [vmem:[#allocation4 + $0x24] sm:$0xf]  ;;  %v3398_v54 = vld [vmem:[%s4367_s5 + $0x1f8] sm:$0xff] }
 0x171   :  { %1288 = vmatpush.bf16.msrb.mxu1 %v2775_v37  ;;  %v3488_v37 = vld [vmem:[%s4366_s4 + $0x3] ss:$0 sm:$0xff] }
 0x172   :  { %1251 = vmatpush.bf16.msra.mxu3 %v2751_v11 }
 0x174   :  { %1306 = vmatpush.bf16.msrb.mxu2 %v2795_v24  ;;  %v3335_v24 = vld [vmem:[#allocation4 + $0x4] sm:$0xf] }
 0x175   :  { %981 = vmatmul.bf16.gmra.mxu0 %v820_v38  ;;  %v3351_v38 = vld [vmem:[#allocation4 + $0x84] sm:$0xf]  ;;  %1289 = vmatpush.bf16.msrb.mxu1 %v2759_v18  ;;  %v2723_v34 = vor.u32 %v3335_v24, %v2720_v63  ;;  %v3382_v18 = vld [vmem:[%s4367_s5 + $0x178] sm:$0xff] }
 0x176   :  { %v2787_v57 = vor.u32 %v3351_v38, %v2784_v42  ;;  %v2742_v38 = vld [vmem:[#allocation4 + $0x28] sm:$0xf]  ;;  %v2739_v42 = vor.u32 %v3339_v25, %v2736_v35  ;;  %1252 = vmatpush.bf16.msra.mxu3 %v2735_v32  ;;  %v3389_v25 = vld [vmem:[%s4367_s5 + $0x1b0] sm:$0xff]  ;;  %v3490_v35 = vld [vmem:[%s4366_s4 + $0x5] ss:$0 sm:$0xff] }
 0x177   :  { %v2743_v46 = vor.u32 %v3342_v40, %v2742_v38 }
 0x178   :  { %1268 = vmatpush.bf16.msrb.mxu0 %v2787_v57  ;;  %1307 = vmatpush.bf16.msrb.mxu2 %v2779_v39  ;;  %v2744_v57 = vld [vmem:[#allocation4 + $0x38] sm:$0xf0] }
 0x179   :  { %v2747_v58 = vor.u32 %v3340_v53, %v2744_v57  ;;  %1290 = vmatpush.bf16.msrb.mxu1 %v2743_v46 }
 0x17a   :  { %1253 = vmatpush.bf16.msra.mxu3 %v2719_v61 }
 0x17c   :  { %1269 = vmatpush.bf16.msrb.mxu0 %v2771_v5  ;;  %1308 = vmatpush.bf16.msrb.mxu2 %v2763_v20  ;;  %v3336_v5 = vld [vmem:[#allocation4 + $0xc] sm:$0xf]  ;;  %v3374_v20 = vld [vmem:[%s4367_s5 + $0x138] sm:$0xff] }
 0x17d   :  { %v2731_v9 = vor.u32 %v3336_v5, %v2728_v36  ;;  %1291 = vmatpush.bf16.msrb.mxu1 %v2727_v4 }
 0x17e   :  { %1691 = vmatpush.bf16.msrb.mxu3 %v3374_v20  ;;  %v3372_v20 = vld [vmem:[%s4367_s5 + $0x128] sm:$0xff] }
 0x180   :  { %1270 = vmatpush.bf16.msrb.mxu0 %v2755_v48  ;;  %1309 = vmatpush.bf16.msrb.mxu2 %v2747_v58 }
 0x181   :  { %1729 = vmatpush.bf16.msra.mxu1 %v3390_v60  ;;  %v3379_v60 = vld [vmem:[%s4367_s5 + $0x160] sm:$0xff] }
 0x184   :  { %1271 = vmatpush.bf16.msrb.mxu0 %v2739_v42  ;;  %1310 = vmatpush.bf16.msrb.mxu2 %v2731_v9 }
 0x185   :  { %1730 = vmatpush.bf16.msra.mxu1 %v3389_v25  ;;  %v3386_v25 = vld [vmem:[%s4367_s5 + $0x198] sm:$0xff] }
 0x188   :  { %1272 = vmatpush.bf16.msrb.mxu0 %v2723_v34  ;;  %1748 = vmatpush.bf16.msra.mxu2 %v3398_v54  ;;  %v3396_v54 = vld [vmem:[%s4367_s5 + $0x1e8] sm:$0xff] }
 0x18c   :  { %1710 = vmatpush.bf16.msra.mxu0 %v3382_v18  ;;  %v3397_v18 = vld [vmem:[%s4367_s5 + $0x1f0] sm:$0xff] }
 0x18d   :  { %1749 = vmatpush.bf16.msra.mxu2 %v3397_v18 }
 0x190   :  { %1711 = vmatpush.bf16.msra.mxu0 %v3381_v21  ;;  %v3378_v21 = vld [vmem:[%s4367_s5 + $0x158] sm:$0xff] }
 0x191   :  { %1750 = vmatpush.bf16.msra.mxu2 %v3396_v54 }
 0x1cd   :  { %v996_v10 = vpop.f32.mrf.mxu1 }
 0x1d5   :  { %v998_v11 = vpop.f32.mrf.mxu1 }
 0x1dd   :  { %v1001_v53 = vpop.f32.mrf.mxu1 }
 0x1e0   :  { %v1015_v39 = vpop.f32.mrf.mxu2 }
 0x1e2   :  { %v977_v6 = vpop.f32.mrf.mxu0 }
 0x1e3   :  { %v978_v14 = vadd.f32 %v3488_v37, %v977_v6 }
 0x1e5   :  { %v997_v43 = vadd.f32 %v996_v10, %v978_v14  ;;  %v1003_v5 = vpop.f32.mrf.mxu1 }
 0x1e7   :  { %v1016_v15 = vadd.f32 %v1015_v39, %v997_v43 }
 0x1e8   :  { %v1017_v17 = vpop.f32.mrf.mxu2 }
 0x1e9   :  { %v1028_v32 = vmul.f32 %v3489_v16, %v1016_v15 }
 0x1ea   :  { %v979_v48 = vpop.f32.mrf.mxu0 }
 0x1eb   :  { %v980_v0 = vadd.f32 %v3488_v37, %v979_v48  ;;  %v1033_v42 = vadd.f32 %v3490_v35, %v1028_v32  ;;  %v3380_v48 = vld [vmem:[%s4367_s5 + $0x168] sm:$0xff]  ;;  %v3371_v32 = vld [vmem:[%s4367_s5 + $0x120] sm:$0xff] }
 0x1ec   :  { %1712 = vmatpush.bf16.msra.mxu0 %v3380_v48 }
 0x1ed   :  { %v999_v38 = vadd.f32 %v998_v11, %v980_v0  ;;  %v1037_v24 = vmax.f32 %v1033_v42, 0.0  ;;  %v3387_v0 = vld [vmem:[%s4367_s5 + $0x1a0] sm:$0xff]  ;;  %v3370_v42 = vld [vmem:[%s4367_s5 + $0x118] sm:$0xff] }
 0x1ef   :  { %v1018_v40 = vadd.f32 %v1017_v17, %v999_v38  ;;  %v3377_v38 = vld [vmem:[%s4367_s5 + $0x150] sm:$0xff] }
 0x1f0   :  { %v1020_v59 = vpop.f32.mrf.mxu2  ;;  %1713 = vmatpush.bf16.msra.mxu0 %v3379_v60 }
 0x1f1   :  { %v1029_v46 = vmul.f32 %v3489_v16, %v1018_v40  ;;  %v3385_v40 = vld [vmem:[%s4367_s5 + $0x190] sm:$0xff] }
 0x1f2   :  { %v982_v57 = vpop.f32.mrf.mxu0 }
 0x1f3   :  { %v1034_v58 = vadd.f32 %v3490_v35, %v1029_v46  ;;  %v983_v45 = vadd.f32 %v3488_v37, %v982_v57  ;;  %v3394_v46 = vld [vmem:[%s4367_s5 + $0x1d8] sm:$0xff]  ;;  %v3384_v57 = vld [vmem:[%s4367_s5 + $0x188] sm:$0xff] }
 0x1f4   :  { %1714 = vmatpush.bf16.msra.mxu0 %v3378_v21 }
 0x1f5   :  { %v1038_v61 = vmax.f32 %v1034_v58, 0.0  ;;  %v1002_v63 = vadd.f32 %v1001_v53, %v983_v45  ;;  %v3376_v53 = vld [vmem:[%s4367_s5 + $0x148] sm:$0xff]  ;;  %v3369_v58 = vld [vmem:[%s4367_s5 + $0x110] sm:$0xff] }
 0x1f6   :  { %v3393_v45 = vld [vmem:[%s4367_s5 + $0x1d0] sm:$0xff] }
 0x1f7   :  { %v1073_v28 = vpack.c.bf16 %v1038_v61, %v1037_v24  ;;  %v1021_v2 = vadd.f32 %v1020_v59, %v1002_v63  ;;  %v3375_v59 = vld [vmem:[%s4367_s5 + $0x140] sm:$0xff]  ;;  %v3368_v61 = vld [vmem:[%s4367_s5 + $0x108] sm:$0xff] }
 0x1f8   :  { %v1022_v10 = vpop.f32.mrf.mxu2  ;;  %1715 = vmatpush.bf16.msra.mxu0 %v3377_v38  ;;  %v3383_v24 = vld [vmem:[%s4367_s5 + $0x180] sm:$0xff]  ;;  %v3392_v63 = vld [vmem:[%s4367_s5 + $0x1c8] sm:$0xff] }
 0x1f9   :  { %1254 = vmatmul.bf16.vlgmr.msra.gmra.mxu3 %v1073_v28  ;;  %1273 = vmatmul.bf16.vlgmr.msrb.gmra.mxu0 %v1073_v28  ;;  %v1030_v36 = vmul.f32 %v3489_v16, %v1021_v2  ;;  %v3391_v2 = vld [vmem:[%s4367_s5 + $0x1c0] sm:$0xff] }
 0x1fa   :  { %1292 = vmatmul.bf16.vlgmr.msrb.gmra.mxu1 %v1073_v28  ;;  %1311 = vmatmul.bf16.vlgmr.msrb.gmra.mxu2 %v1073_v28  ;;  %v984_v34 = vpop.f32.mrf.mxu0  ;;  %v3367_v28 = vld [vmem:[%s4367_s5 + $0x100] sm:$0xff] }
 0x1fb   :  { %v985_v4 = vadd.f32 %v3488_v37, %v984_v34  ;;  %v1035_v6 = vadd.f32 %v3490_v35, %v1030_v36  ;;  %v3388_v37 = vld [vmem:[%s4367_s5 + $0x1a8] sm:$0xff] }
 0x1fc   :  { %1731 = vmatpush.bf16.msra.mxu1 %v3388_v37  ;;  %1716 = vmatpush.bf16.msra.mxu0 %v3376_v53  ;;  %v2715_v34 = vld [vmem:[%s4365_s3 + $0x3] ss:$8 sm:$0xf] }
 0x1fd   :  { %v1004_v9 = vadd.f32 %v1003_v5, %v985_v4  ;;  %v1039_v11 = vmax.f32 %v1035_v6, 0.0  ;;  %v4059_v4 = vperm.slane %v2715_v34, 1  ;;  %v4061_v5 = vperm.slane %v2715_v34, 2 }
 0x1ff   :  { %v1023_v39 = vadd.f32 %v1022_v10, %v1004_v9 }
 0x200   :  { %1732 = vmatpush.bf16.msra.mxu1 %v3387_v0  ;;  %1717 = vmatpush.bf16.msra.mxu0 %v3375_v59 }
 0x201   :  { %v1031_v14 = vmul.f32 %v3489_v16, %v1023_v39  ;;  %v3373_v16 = vld [vmem:[%s4367_s5 + $0x130] sm:$0xff] }
 0x202   :  { %1692 = vmatpush.bf16.msrb.mxu3 %v3373_v16 }
 0x203   :  { %v1036_v43 = vadd.f32 %v3490_v35, %v1031_v14  ;;  %v3395_v35 = vld [vmem:[%s4367_s5 + $0x1e0] sm:$0xff]  ;;  %v4066_v14 = vperm.slane %v2715_v34, 0 }
 0x204   :  { %1733 = vmatpush.bf16.msra.mxu1 %v3386_v25  ;;  %1751 = vmatpush.bf16.msra.mxu2 %v3395_v35 }
 0x205   :  { %v1040_v15 = vmax.f32 %v1036_v43, 0.0  ;;  %v2844_v43 = vld [vmem:[%s4365_s3 + $0x4] ss:$8 sm:$0xf] }
 0x206   :  { %1693 = vmatpush.bf16.msrb.mxu3 %v3372_v20  ;;  %v4076_v37 = vperm.slane %v2844_v43, 1  ;;  %v4084_v0 = vperm.slane %v2844_v43, 2  ;;  %v4109_v59 = vperm.slane %v2844_v43, 3 }
 0x207   :  { %v1074_v17 = vpack.c.bf16 %v1040_v15, %v1039_v11  ;;  %v4072_v15 = vperm.slane %v2715_v34, 3 }
 0x208   :  { %1734 = vmatpush.bf16.msra.mxu1 %v3385_v40  ;;  %1752 = vmatpush.bf16.msra.mxu2 %v3394_v46 }
 0x209   :  { %1259 = vmatmul.bf16.gmra.mxu3 %v1074_v17  ;;  %1278 = vmatmul.bf16.gmra.mxu0 %v1074_v17 }
 0x20a   :  { %1297 = vmatmul.bf16.gmra.mxu1 %v1074_v17  ;;  %1316 = vmatmul.bf16.gmra.mxu2 %v1074_v17 }
 0x20b   :  { %1694 = vmatpush.bf16.msrb.mxu3 %v3371_v32 }
 0x20c   :  { %1735 = vmatpush.bf16.msra.mxu1 %v3384_v57  ;;  %1753 = vmatpush.bf16.msra.mxu2 %v3393_v45 }
 0x20f   :  { %1695 = vmatpush.bf16.msrb.mxu3 %v3370_v42 }
 0x210   :  { %1736 = vmatpush.bf16.msra.mxu1 %v3383_v24  ;;  %1754 = vmatpush.bf16.msra.mxu2 %v3392_v63 }
 0x213   :  { %1696 = vmatpush.bf16.msrb.mxu3 %v3369_v58  ;;  %v4103_v58 = vperm.slane %v2844_v43, 0 }
 0x214   :  { %1755 = vmatpush.bf16.msra.mxu2 %v3391_v2 }
 0x217   :  { %1697 = vmatpush.bf16.msrb.mxu3 %v3368_v61 }
 0x21b   :  { %1698 = vmatpush.bf16.msrb.mxu3 %v3367_v28 }
 0x276   :  { %v1274_v36 = vpop.f32.mrf.mxu0 }
 0x277   :  { %v1275_v9 = vadd.f32 %v1274_v36, %v4059_v4  ;;  %v1293_v10 = vpop.f32.mrf.mxu1 }
 0x278   :  { %v1294_v39 = vadd.f32 %v1293_v10, %v4061_v5 }
 0x279   :  { %v1323_v6 = vadd.f32 %v1275_v9, %v3768_v30  ;;  %v2845_v30 = vld [vmem:[%s4365_s3 + $0x5] ss:$8 sm:$0xf] }
 0x27a   :  { %v1324_v11 = vadd.f32 %v1294_v39, %v3795_v47  ;;  %v4093_v40 = vperm.slane %v2845_v30, 1  ;;  %v4098_v53 = vperm.slane %v2845_v30, 2  ;;  %v4114_v63 = vperm.slane %v2845_v30, 0 }
 0x27b   :  { %v4074_v48 = vmul.f32 0.5, %v1323_v6  ;;  %v4120_v36 = vperm.slane %v2845_v30, 3 }
 0x27c   :  { %v1255_v17 = vpop.f32.mrf.mxu3  ;;  %v4082_v60 = vmul.f32 0.5, %v1324_v11 }
 0x27d   :  { %v1256_v16 = vadd.f32 %v1255_v17, %v4066_v14  ;;  %v1312_v18 = vpop.f32.mrf.mxu2  ;;  %v1368_v38 = vmul.f32 %v4076_v37, %v4074_v48 }
 0x27e   :  { %v1313_v47 = vadd.f32 %v1312_v18, %v4072_v15  ;;  %v1276_v20 = vpop.f32.mrf.mxu0  ;;  %v1369_v46 = vmul.f32 %v4084_v0, %v4082_v60 }
 0x27f   :  { %v1322_v54 = vadd.f32 %v1256_v16, %v3763_v27  ;;  %v1277_v21 = vadd.f32 %v1276_v20, %v4059_v4  ;;  %v1295_v25 = vpop.f32.mrf.mxu1  ;;  %v1393_v61 = vadd.f32 %v4093_v40, %v1368_v38 }
 0x280   :  { %v1325_v32 = vadd.f32 %v1313_v47, %v3803_v50  ;;  %v1296_v35 = vadd.f32 %v1295_v25, %v4061_v5  ;;  %v1394_v34 = vadd.f32 %v4098_v53, %v1369_v46 }
 0x281   :  { %v1327_v42 = vadd.f32 %v1277_v21, %v3800_v49  ;;  %v4101_v57 = vmul.f32 0.5, %v1322_v54  ;;  %v1409_v54 = vmax.f32 %v1393_v61, 0.0 }
 0x282   :  { %v1328_v27 = vadd.f32 %v1296_v35, %v3829_v3  ;;  %v4107_v45 = vmul.f32 0.5, %v1325_v32  ;;  %v1410_v35 = vmax.f32 %v1394_v34, 0.0 }
 0x283   :  { %v4105_v50 = vmul.f32 0.5, %v1327_v42  ;;  %v1367_v6 = vmul.f32 %v4103_v58, %v4101_v57 }
 0x284   :  { %v4111_v24 = vmul.f32 0.5, %v1328_v27  ;;  %v1257_v49 = vpop.f32.mrf.mxu3  ;;  %v1370_v18 = vmul.f32 %v4109_v59, %v4107_v45 }
 0x285   :  { %v1372_v3 = vmul.f32 %v4076_v37, %v4105_v50  ;;  %v1258_v28 = vadd.f32 %v1257_v49, %v4066_v14  ;;  %v1314_v2 = vpop.f32.mrf.mxu2  ;;  %v1392_v46 = vadd.f32 %v4114_v63, %v1367_v6 }
 0x286   :  { %v1373_v9 = vmul.f32 %v4084_v0, %v4111_v24  ;;  %v1315_v10 = vadd.f32 %v1314_v2, %v4072_v15  ;;  %v1279_v39 = vpop.f32.mrf.mxu0  ;;  %v1395_v49 = vadd.f32 %v4120_v36, %v1370_v18 }
 0x287   :  { %v1397_v43 = vadd.f32 %v4093_v40, %v1372_v3  ;;  %v1326_v11 = vadd.f32 %v1258_v28, %v3791_v44  ;;  %v1280_v17 = vadd.f32 %v1279_v39, %v4059_v4  ;;  %v1298_v16 = vpop.f32.mrf.mxu1 }
 0x288   :  { %v1398_v30 = vadd.f32 %v4098_v53, %v1373_v9  ;;  %v1329_v47 = vadd.f32 %v1315_v10, %v3832_v7  ;;  %v1299_v20 = vadd.f32 %v1298_v16, %v4061_v5 }
 0x289   :  { %v1413_v21 = vmax.f32 %v1397_v43, 0.0  ;;  %v4135_v25 = vmul.f32 0.5, %v1326_v11  ;;  %v1331_v32 = vadd.f32 %v1280_v17, %v3841_v13  ;;  %v1408_v43 = vmax.f32 %v1392_v46, 0.0 }
 0x28a   :  { %v1414_v44 = vmax.f32 %v1398_v30, 0.0  ;;  %v4138_v38 = vmul.f32 0.5, %v1329_v47  ;;  %v1332_v42 = vadd.f32 %v1299_v20, %v3863_v51  ;;  %v1411_v30 = vmax.f32 %v1395_v49, 0.0 }
 0x28b   :  { %v1371_v27 = vmul.f32 %v4103_v58, %v4135_v25  ;;  %v1490_v7 = vpack.c.bf16 %v1413_v21, %v1409_v54  ;;  %v4148_v2 = vmul.f32 0.5, %v1331_v32 }
 0x28c   :  { %v1374_v61 = vmul.f32 %v4109_v59, %v4138_v38  ;;  %v1260_v3 = vpop.f32.mrf.mxu3  ;;  %v1491_v28 = vpack.c.bf16 %v1414_v44, %v1410_v35  ;;  %v4152_v10 = vmul.f32 0.5, %v1332_v42 }
 0x28d   :  { %v1396_v13 = vadd.f32 %v4114_v63, %v1371_v27  ;;  %v1261_v34 = vadd.f32 %v1260_v3, %v4066_v14  ;;  %v1317_v51 = vpop.f32.mrf.mxu2  ;;  %1718 = vmatmul.bf16.vlgmr.msra.gmra.mxu0 %v1490_v7  ;;  %v1376_v21 = vmul.f32 %v4076_v37, %v4148_v2 }
 0x28e   :  { %v1399_v9 = vadd.f32 %v4120_v36, %v1374_v61  ;;  %v1318_v39 = vadd.f32 %v1317_v51, %v4072_v15  ;;  %1737 = vmatmul.bf16.vlgmr.msra.gmra.mxu1 %v1491_v28  ;;  %v1281_v6 = vpop.f32.mrf.mxu0  ;;  %v1377_v44 = vmul.f32 %v4084_v0, %v4152_v10 }
 0x28f   :  { %v1412_v11 = vmax.f32 %v1396_v13, 0.0  ;;  %v1330_v17 = vadd.f32 %v1261_v34, %v3835_v8  ;;  %v1282_v16 = vadd.f32 %v1281_v6, %v4059_v4  ;;  %v1300_v18 = vpop.f32.mrf.mxu1 }
 0x290   :  { %v1415_v47 = vmax.f32 %v1399_v9, 0.0  ;;  %v1333_v20 = vadd.f32 %v1318_v39, %v3870_v56  ;;  %v1301_v54 = vadd.f32 %v1300_v18, %v4061_v5  ;;  %v1402_v28 = vadd.f32 %v4098_v53, %v1377_v44  ;;  %v3412_v44 = vld [vmem:[#allocation6 + $0x128] sm:$0xff] }
 0x291   :  { %v1335_v32 = vadd.f32 %v1282_v16, %v3866_v52  ;;  %v1489_v35 = vpack.c.bf16 %v1412_v11, %v1408_v43  ;;  %v4165_v4 = vmul.f32 0.5, %v1330_v17 }
 0x292   :  { %v1336_v8 = vadd.f32 %v1301_v54, %v3884_v31  ;;  %v1492_v42 = vpack.c.bf16 %v1415_v47, %v1411_v30  ;;  %v4169_v56 = vmul.f32 0.5, %v1333_v20  ;;  %v1401_v31 = vadd.f32 %v4093_v40, %v1376_v21 }
 0x293   :  { %v4167_v46 = vmul.f32 0.5, %v1335_v32  ;;  %1699 = vmatmul.bf16.vlgmr.msrb.gmra.mxu3 %v1489_v35  ;;  %v1375_v13 = vmul.f32 %v4103_v58, %v4165_v4  ;;  %v1418_v43 = vmax.f32 %v1402_v28, 0.0  ;;  %v3414_v35 = vld [vmem:[#allocation6 + $0x138] sm:$0xff]  ;;  %v3404_v28 = vld [vmem:[#allocation6 + $0xe8] sm:$0xff] }
 0x294   :  { %v4171_v5 = vmul.f32 0.5, %v1336_v8  ;;  %1756 = vmatmul.bf16.vlgmr.msra.gmra.mxu2 %v1492_v42  ;;  %v1262_v27 = vpop.f32.mrf.mxu3  ;;  %2027 = vmatpush.bf16.msrb.mxu0 %v3414_v35  ;;  %v3411_v8 = vld [vmem:[#allocation6 + $0x120] sm:$0xff]  ;;  %v3422_v42 = vld [vmem:[#allocation6 + $0x178] sm:$0xff] }
 0x295   :  { %v1380_v52 = vmul.f32 %v4076_v37, %v4167_v46  ;;  %v1263_v7 = vadd.f32 %v1262_v27, %v4066_v14  ;;  %v1319_v49 = vpop.f32.mrf.mxu2  ;;  %v1378_v14 = vmul.f32 %v4109_v59, %v4169_v56  ;;  %2046 = vmatpush.bf16.msrb.mxu1 %v3422_v42  ;;  %v3409_v27 = vld [vmem:[#allocation6 + $0x110] sm:$0xff] }
 0x296   :  { %v1381_v61 = vmul.f32 %v4084_v0, %v4171_v5  ;;  %v1320_v3 = vadd.f32 %v1319_v49, %v4072_v15  ;;  %v1417_v0 = vmax.f32 %v1401_v31, 0.0  ;;  %v3408_v49 = vld [vmem:[#allocation6 + $0x108] sm:$0xff]  ;;  %v3405_v31 = vld [vmem:[#allocation6 + $0xf0] sm:$0xff] }
 0x297   :  { %v1334_v34 = vadd.f32 %v1263_v7, %v3859_v41  ;;  %v1405_v51 = vadd.f32 %v4093_v40, %v1380_v52  ;;  %v1400_v40 = vadd.f32 %v4114_v63, %v1375_v13  ;;  %v3406_v52 = vld [vmem:[#allocation6 + $0xf8] sm:$0xff]  ;;  %v3420_v7 = vld [vmem:[#allocation6 + $0x168] sm:$0xff] }
 0x298   :  { %v1337_v37 = vadd.f32 %v1320_v3, %v3887_v55  ;;  %v1406_v9 = vadd.f32 %v4098_v53, %v1381_v61  ;;  %v1403_v53 = vadd.f32 %v4120_v36, %v1378_v14  ;;  %2008 = vmatpush.bf16.msra.mxu3 %v3406_v52  ;;  %v3419_v61 = vld [vmem:[#allocation6 + $0x160] sm:$0xff]  ;;  %v3418_v13 = vld [vmem:[#allocation6 + $0x158] sm:$0xff] }
 0x299   :  { %v4189_v39 = vmul.f32 0.5, %v1334_v34  ;;  %v1421_v15 = vmax.f32 %v1405_v51, 0.0  ;;  %v1416_v47 = vmax.f32 %v1400_v40, 0.0  ;;  %v3407_v3 = vld [vmem:[#allocation6 + $0x100] sm:$0xff]  ;;  %v3417_v51 = vld [vmem:[#allocation6 + $0x150] sm:$0xff] }
 0x29a   :  { %v4191_v6 = vmul.f32 0.5, %v1337_v37  ;;  %v1422_v11 = vmax.f32 %v1406_v9, 0.0  ;;  %v1419_v54 = vmax.f32 %v1403_v53, 0.0  ;;  %v3403_v34 = vld [vmem:[#allocation6 + $0xe0] sm:$0xff] }
 0x29b   :  { %v1379_v41 = vmul.f32 %v4103_v58, %v4189_v39  ;;  %v1494_v17 = vpack.c.bf16 %v1421_v15, %v1417_v0  ;;  %v3491_v37 = vld [vmem:[%s4366_s4 + $0x6] ss:$0 sm:$0xff]  ;;  %v3402_v0 = vld [vmem:[#allocation6 + $0xd8] sm:$0xff]  ;;  %v3416_v15 = vld [vmem:[#allocation6 + $0x148] sm:$0xff] }
 0x29c   :  { %v1382_v16 = vmul.f32 %v4109_v59, %v4191_v6  ;;  %v1495_v55 = vpack.c.bf16 %v1422_v11, %v1418_v43  ;;  %v3413_v59 = vld [vmem:[#allocation6 + $0x130] sm:$0xff]  ;;  %2009 = vmatpush.bf16.msra.mxu3 %v3405_v31  ;;  %v3415_v40 = vld [vmem:[#allocation6 + $0x140] sm:$0xff] }
 0x29d   :  { %1723 = vmatmul.bf16.gmra.mxu0 %v1494_v17  ;;  %v1404_v18 = vadd.f32 %v4114_v63, %v1379_v41  ;;  %v3410_v63 = vld [vmem:[#allocation6 + $0x118] sm:$0xff]  ;;  %v3401_v17 = vld [vmem:[#allocation6 + $0xd0] sm:$0xff] }
 0x29e   :  { %1742 = vmatmul.bf16.gmra.mxu1 %v1495_v55  ;;  %v1407_v30 = vadd.f32 %v4120_v36, %v1382_v16  ;;  %2028 = vmatpush.bf16.msrb.mxu0 %v3413_v59  ;;  %v3421_v36 = vld [vmem:[#allocation6 + $0x170] sm:$0xff] }
 0x29f   :  { %v1420_v20 = vmax.f32 %v1404_v18, 0.0  ;;  %2047 = vmatpush.bf16.msrb.mxu1 %v3421_v36  ;;  %v3400_v18 = vld [vmem:[#allocation6 + $0xc8] sm:$0xff] }
 0x2a0   :  { %v1423_v21 = vmax.f32 %v1407_v30, 0.0  ;;  %2010 = vmatpush.bf16.msra.mxu3 %v3404_v28 }
 0x2a1   :  { %v1493_v58 = vpack.c.bf16 %v1420_v20, %v1416_v47 }
 0x2a2   :  { %v1496_v32 = vpack.c.bf16 %v1423_v21, %v1419_v54  ;;  %2029 = vmatpush.bf16.msrb.mxu0 %v3412_v44  ;;  %v3492_v54 = vld [vmem:[%s4366_s4 + $0x7] ss:$0 sm:$0xff]  ;;  %v3493_v44 = vld [vmem:[%s4366_s4 + $0x8] ss:$0 sm:$0xff] }
 0x2a3   :  { %1704 = vmatmul.bf16.gmra.mxu3 %v1493_v58  ;;  %2048 = vmatpush.bf16.msrb.mxu1 %v3420_v7  ;;  %v3399_v58 = vld [vmem:[#allocation6 + $0xc0] sm:$0xff] }
 0x2a4   :  { %1761 = vmatmul.bf16.gmra.mxu2 %v1496_v32  ;;  %2011 = vmatpush.bf16.msra.mxu3 %v3403_v34 }
 0x2a6   :  { %2030 = vmatpush.bf16.msrb.mxu0 %v3411_v8 }
 0x2a7   :  { %2049 = vmatpush.bf16.msrb.mxu1 %v3419_v61 }
 0x2a8   :  { %2012 = vmatpush.bf16.msra.mxu3 %v3402_v0 }
 0x2aa   :  { %2031 = vmatpush.bf16.msrb.mxu0 %v3410_v63 }
 0x2ab   :  { %2050 = vmatpush.bf16.msrb.mxu1 %v3418_v13 }
 0x2ac   :  { %2013 = vmatpush.bf16.msra.mxu3 %v3401_v17 }
 0x2ae   :  { %2032 = vmatpush.bf16.msrb.mxu0 %v3409_v27 }
 0x2af   :  { %2051 = vmatpush.bf16.msrb.mxu1 %v3417_v51 }
 0x2b0   :  { %2014 = vmatpush.bf16.msra.mxu3 %v3400_v18 }
 0x2b2   :  { %2033 = vmatpush.bf16.msrb.mxu0 %v3408_v49 }
 0x2b3   :  { %2052 = vmatpush.bf16.msrb.mxu1 %v3416_v15 }
 0x2b4   :  { %2015 = vmatpush.bf16.msra.mxu3 %v3399_v58 }
 0x2b6   :  { %2034 = vmatpush.bf16.msrb.mxu0 %v3407_v3 }
 0x2b7   :  { %2053 = vmatpush.bf16.msrb.mxu1 %v3415_v40 }
 0x30a   :  { %v1719_v14 = vpop.f32.mrf.mxu0 }
 0x30b   :  { %v1738_v9 = vpop.f32.mrf.mxu1 }
 0x312   :  { %v1721_v53 = vpop.f32.mrf.mxu0 }
 0x313   :  { %v1740_v30 = vpop.f32.mrf.mxu1 }
 0x316   :  { %v1700_v43 = vpop.f32.mrf.mxu3 }
 0x317   :  { %v1701_v11 = vadd.f32 %v3491_v37, %v1700_v43  ;;  %v1757_v41 = vpop.f32.mrf.mxu2 }
 0x319   :  { %v1720_v16 = vadd.f32 %v1719_v14, %v1701_v11 }
 0x31a   :  { %v1724_v63 = vpop.f32.mrf.mxu0 }
 0x31b   :  { %v1739_v55 = vadd.f32 %v1738_v9, %v1720_v16  ;;  %v1743_v49 = vpop.f32.mrf.mxu1 }
 0x31d   :  { %v1758_v20 = vadd.f32 %v1757_v41, %v1739_v55 }
 0x31e   :  { %v1702_v47 = vpop.f32.mrf.mxu3 }
 0x31f   :  { %v1703_v21 = vadd.f32 %v3491_v37, %v1702_v47  ;;  %v1759_v32 = vpop.f32.mrf.mxu2  ;;  %v1771_v59 = vmul.f32 %v3492_v54, %v1758_v20 }
 0x321   :  { %v1722_v35 = vadd.f32 %v1721_v53, %v1703_v21  ;;  %v1776_v27 = vadd.f32 %v3493_v44, %v1771_v59 }
 0x322   :  { %v1726_v43 = vpop.f32.mrf.mxu0 }
 0x323   :  { %v1741_v8 = vadd.f32 %v1740_v30, %v1722_v35  ;;  %v1780_v28 = vmax.f32 %v1776_v27, 0.0  ;;  %v1745_v40 = vpop.f32.mrf.mxu1 }
 0x325   :  { %v1760_v42 = vadd.f32 %v1759_v32, %v1741_v8  ;;  %v1796_v16 = vrot.slane %v1780_v28, 1 }
 0x326   :  { %v1705_v36 = vpop.f32.mrf.mxu3 }
 0x327   :  { %v1772_v52 = vmul.f32 %v3492_v54, %v1760_v42  ;;  %v1706_v7 = vadd.f32 %v3491_v37, %v1705_v36  ;;  %v1762_v3 = vpop.f32.mrf.mxu2  ;;  %v1784_v42 = vrot.slane %v1780_v28, 7 }
 0x329   :  { %v1777_v31 = vadd.f32 %v3493_v44, %v1772_v52  ;;  %v1725_v61 = vadd.f32 %v1724_v63, %v1706_v7 }
 0x32b   :  { %v1781_v13 = vmax.f32 %v1777_v31, 0.0  ;;  %v1744_v34 = vadd.f32 %v1743_v49, %v1725_v61 }
 0x32d   :  { %v1763_v51 = vadd.f32 %v1762_v3, %v1744_v34  ;;  %v1858_v14 = vpack.c.bf16 %v1781_v13, %v1780_v28  ;;  %v1797_v11 = vrot.slane %v1781_v13, 1  ;;  %v1785_v35 = vrot.slane %v1781_v13, 7 }
 0x32e   :  { %v1707_v9 = vpop.f32.mrf.mxu3 }
 0x32f   :  { %v1773_v0 = vmul.f32 %v3492_v54, %v1763_v51  ;;  %v1708_v15 = vadd.f32 %v3491_v37, %v1707_v9  ;;  %2035 = vmatmul.bf16.vlgmr.msrb.gmra.mxu0 %v1858_v14  ;;  %v1764_v18 = vpop.f32.mrf.mxu2  ;;  %v1802_v20 = vsel %vm744_vm1, %v1796_v16, %v1797_v11  ;;  %v1790_v52 = vsel %vm711_vm2, %v1784_v42, %v1785_v35  ;;  %v3249_v9 = vld [vmem:[#allocation4 + $0x1e0] sm:$0xf] }
 0x330   :  { %v1804_v37 = vmul.f32 %v1802_v20, %v3907_v26 }
 0x331   :  { %v1778_v41 = vadd.f32 %v3493_v44, %v1773_v0  ;;  %v1727_v17 = vadd.f32 %v1726_v43, %v1708_v15  ;;  %v3453_v0 = vld [vmem:[#allocation4 + $0x1ec] sm:$0xf0]  ;;  %v3257_v43 = vld [vmem:[#allocation4 + $0x1e8] sm:$0xf] }
 0x332   :  { %v3250_v15 = vor.u32 %v3453_v0, %v3249_v9  ;;  %v3185_v9 = vld [vmem:[#allocation4 + $0x160] sm:$0xf]  ;;  %v3437_v0 = vld [vmem:[#allocation4 + $0x16c] sm:$0xf0] }
 0x333   :  { %v1782_v55 = vmax.f32 %v1778_v41, 0.0  ;;  %v1746_v53 = vadd.f32 %v1745_v40, %v1727_v17  ;;  %v3452_v40 = vld [vmem:[#allocation4 + $0x1ec] sm:$0xf] }
 0x334   :  { %2287 = vmatpush.bf16.msrb.mxu2 %v3250_v15  ;;  %v3186_v15 = vor.u32 %v3437_v0, %v3185_v9  ;;  %v3139_v9 = vld [vmem:[#allocation4 + $0x110] sm:$0xf0]  ;;  %v3145_v0 = vld [vmem:[#allocation4 + $0x108] sm:$0xf] }
 0x335   :  { %v1798_v30 = vrot.slane %v1782_v55, 1  ;;  %v1765_v47 = vadd.f32 %v1764_v18, %v1746_v53  ;;  %v1786_v28 = vrot.slane %v1782_v55, 7  ;;  %v3235_v18 = vld [vmem:[#allocation4 + $0x1d0] sm:$0xf0] }
 0x337   :  { %v1774_v21 = vmul.f32 %v3492_v54, %v1765_v47  ;;  %v1801_v58 = vsel %vm744_vm1, %v1797_v11, %v1798_v30  ;;  %v3454_v11 = vld [vmem:[#allocation4 + $0x1f4] sm:$0xf0] }
 0x338   :  { %v1805_v32 = vmul.f32 %v1801_v58, %v3918_v1  ;;  %v1793_v1 = vmul.f32 %v1790_v52, %v3927_v12  ;;  %v4234_v17 = vor.u32 %v3454_v11, %v3257_v43  ;;  %v3450_v47 = vld [vmem:[#allocation4 + $0x1d4] sm:$0xf0]  ;;  %v3448_v58 = vld [vmem:[#allocation4 + $0x1cc] sm:$0xf]  ;;  %v3193_v43 = vld [vmem:[#allocation4 + $0x168] sm:$0xf] }
 0x339   :  { %v1779_v59 = vadd.f32 %v3493_v44, %v1774_v21  ;;  %v3446_v52 = vld [vmem:[#allocation4 + $0x1b4] sm:$0xf0] }
 0x33a   :  { %v1859_v8 = vpack.c.bf16 %v1805_v32, %v1804_v37  ;;  %2325 = vmatpush.bf16.msra.mxu0 %v4234_v17  ;;  %v3243_v37 = vld [vmem:[#allocation4 + $0x1d8] sm:$0xf0] }
 0x33b   :  { %v1783_v63 = vmax.f32 %v1779_v59, 0.0  ;;  %v4242_v32 = vor.u32 %v3448_v58, %v3243_v37  ;;  %v3445_v59 = vld [vmem:[#allocation4 + $0x1ac] sm:$0xf0]  ;;  %v3434_v58 = vld [vmem:[#allocation4 + $0x154] sm:$0xf0] }
 0x33c   :  { %2054 = vmatmul.bf16.vlgmr.msrb.gmra.mxu1 %v1859_v8  ;;  %v3443_v8 = vld [vmem:[#allocation4 + $0x1a4] sm:$0xf] }
 0x33d   :  { %v1787_v36 = vrot.slane %v1783_v63, 7  ;;  %v1861_v27 = vpack.c.bf16 %v1783_v63, %v1782_v55  ;;  %v1799_v7 = vrot.slane %v1783_v63, 1  ;;  %v3447_v55 = vld [vmem:[#allocation4 + $0x1c4] sm:$0xf]  ;;  %v3219_v63 = vld [vmem:[#allocation4 + $0x1b0] sm:$0xf0] }
 0x33e   :  { %v3238_v20 = vor.u32 %v3447_v55, %v3235_v18  ;;  %v3169_v55 = vld [vmem:[#allocation4 + $0x140] sm:$0xf]  ;;  %v3431_v18 = vld [vmem:[#allocation4 + $0x144] sm:$0xf] }
 0x33f   :  { %2040 = vmatmul.bf16.gmra.mxu0 %v1861_v27  ;;  %v1791_v54 = vsel %vm711_vm2, %v1787_v36, %v1784_v42  ;;  %v1800_v44 = vsel %vm744_vm1, %v1798_v30, %v1799_v7  ;;  %v1803_v31 = vsel %vm744_vm1, %v1799_v7, %v1796_v16  ;;  %v1788_v34 = vsel %vm711_vm2, %v1786_v28, %v1787_v36  ;;  %v3259_v16 = vld [vmem:[#allocation4 + $0x1f8] sm:$0xf0]  ;;  %v3241_v30 = vld [vmem:[#allocation4 + $0x1c8] sm:$0xf] }
 0x340   :  { %v1792_v26 = vmul.f32 %v1791_v54, %v3912_v23  ;;  %v1806_v61 = vmul.f32 %v1800_v44, %v3922_v62  ;;  %v1807_v3 = vmul.f32 %v1803_v31, %v3937_v19  ;;  %v1789_v23 = vsel %vm711_vm2, %v1785_v35, %v1786_v28  ;;  %v3451_v62 = vld [vmem:[#allocation4 + $0x1e4] sm:$0xf]  ;;  %v3251_v19 = vld [vmem:[#allocation4 + $0x1f0] sm:$0xf0]  ;;  %v3217_v35 = vld [vmem:[#allocation4 + $0x1a0] sm:$0xf] }
 0x341   :  { %v1795_v12 = vmul.f32 %v1788_v34, %v3943_v22  ;;  %v1794_v51 = vmul.f32 %v1789_v23, %v3947_v29  ;;  %v3254_v41 = vor.u32 %v3451_v62, %v3251_v19  ;;  %v4236_v33 = vor.u32 %v3452_v40, %v3259_v16  ;;  %v3233_v22 = vld [vmem:[#allocation4 + $0x1c0] sm:$0xf]  ;;  %v3449_v29 = vld [vmem:[#allocation4 + $0x1cc] sm:$0xf0]  ;;  %v3225_v36 = vld [vmem:[#allocation4 + $0x1a8] sm:$0xf] }
 0x342   :  { %v1857_v49 = vpack.c.bf16 %v1793_v1, %v1792_v26  ;;  %v1862_v13 = vpack.c.bf16 %v1807_v3, %v1806_v61  ;;  %v3234_v53 = vor.u32 %v3449_v29, %v3233_v22  ;;  %v4240_v21 = vor.u32 %v3450_v47, %v3241_v30  ;;  %v3444_v54 = vld [vmem:[#allocation4 + $0x1ac] sm:$0xf]  ;;  %v3227_v7 = vld [vmem:[#allocation4 + $0x1b8] sm:$0xf0]  ;;  %v3441_v44 = vld [vmem:[#allocation4 + $0x18c] sm:$0xf0] }
 0x343   :  { %v1860_v14 = vpack.c.bf16 %v1795_v12, %v1794_v51  ;;  %2306 = vmatpush.bf16.msrb.mxu3 %v3254_v41  ;;  %2344 = vmatpush.bf16.msra.mxu1 %v4236_v33  ;;  %v3218_v42 = vor.u32 %v3445_v59, %v3217_v35  ;;  %v3222_v27 = vor.u32 %v3443_v8, %v3219_v63  ;;  %v3439_v31 = vld [vmem:[#allocation4 + $0x184] sm:$0xf]  ;;  %v3203_v3 = vld [vmem:[#allocation4 + $0x190] sm:$0xf0]  ;;  %v3209_v28 = vld [vmem:[#allocation4 + $0x188] sm:$0xf] }
 0x344   :  { %2016 = vmatmul.bf16.vlgmr.msra.gmra.mxu3 %v1857_v49  ;;  %2288 = vmatpush.bf16.msrb.mxu2 %v3234_v53  ;;  %v4246_v26 = vor.u32 %v3446_v52, %v3225_v36  ;;  %v4248_v1 = vor.u32 %v3444_v54, %v3227_v7  ;;  %v3201_v49 = vld [vmem:[#allocation4 + $0x180] sm:$0xf]  ;;  %v3206_v34 = vor.u32 %v3439_v31, %v3203_v3  ;;  %v3440_v12 = vld [vmem:[#allocation4 + $0x18c] sm:$0xf]  ;;  %v3211_v51 = vld [vmem:[#allocation4 + $0x198] sm:$0xf0] }
 0x345   :  { %2326 = vmatpush.bf16.msra.mxu0 %v4240_v21  ;;  %v3202_v61 = vor.u32 %v3441_v44, %v3201_v49  ;;  %v3435_v62 = vld [vmem:[#allocation4 + $0x164] sm:$0xf]  ;;  %v3187_v19 = vld [vmem:[#allocation4 + $0x170] sm:$0xf0]  ;;  %v3438_v41 = vld [vmem:[#allocation4 + $0x174] sm:$0xf0] }
 0x346   :  { %v3190_v11 = vor.u32 %v3435_v62, %v3187_v19  ;;  %v3436_v40 = vld [vmem:[#allocation4 + $0x16c] sm:$0xf]  ;;  %v3195_v16 = vld [vmem:[#allocation4 + $0x178] sm:$0xf0]  ;;  %v4258_v22 = vor.u32 %v3438_v41, %v3193_v43  ;;  %v3433_v53 = vld [vmem:[#allocation4 + $0x14c] sm:$0xf0] }
 0x347   :  { %2307 = vmatpush.bf16.msrb.mxu3 %v3238_v20  ;;  %2345 = vmatpush.bf16.msra.mxu1 %v4242_v32  ;;  %v4260_v29 = vor.u32 %v3436_v40, %v3195_v16  ;;  %v3170_v30 = vor.u32 %v3433_v53, %v3169_v55  ;;  %v3171_v47 = vld [vmem:[#allocation4 + $0x150] sm:$0xf0]  ;;  %v3177_v20 = vld [vmem:[#allocation4 + $0x148] sm:$0xf]  ;;  %v3432_v59 = vld [vmem:[#allocation4 + $0x14c] sm:$0xf] }
 0x348   :  { %2289 = vmatpush.bf16.msrb.mxu2 %v3218_v42  ;;  %v3174_v37 = vor.u32 %v3431_v18, %v3171_v47  ;;  %v3178_v35 = vor.u32 %v3434_v58, %v3177_v20  ;;  %v3179_v8 = vld [vmem:[#allocation4 + $0x158] sm:$0xf0]  ;;  %v3153_v63 = vld [vmem:[#allocation4 + $0x120] sm:$0xf]  ;;  %v3429_v36 = vld [vmem:[#allocation4 + $0x12c] sm:$0xf0] }
 0x349   :  { %2327 = vmatpush.bf16.msra.mxu0 %v4246_v26  ;;  %v3182_v42 = vor.u32 %v3432_v59, %v3179_v8  ;;  %v3154_v52 = vor.u32 %v3429_v36, %v3153_v63  ;;  %v3155_v54 = vld [vmem:[#allocation4 + $0x130] sm:$0xf0]  ;;  %v3161_v7 = vld [vmem:[#allocation4 + $0x128] sm:$0xf]  ;;  %v3430_v49 = vld [vmem:[#allocation4 + $0x134] sm:$0xf0] }
 0x34a   :  { %v3162_v31 = vor.u32 %v3430_v49, %v3161_v7  ;;  %v3163_v3 = vld [vmem:[#allocation4 + $0x138] sm:$0xf0]  ;;  %v3426_v62 = vld [vmem:[#allocation4 + $0x114] sm:$0xf0]  ;;  %v3424_v43 = vld [vmem:[#allocation4 + $0x10c] sm:$0xf] }
 0x34b   :  { %2308 = vmatpush.bf16.msrb.mxu3 %v3222_v27  ;;  %2346 = vmatpush.bf16.msra.mxu1 %v4248_v1  ;;  %v3427_v27 = vld [vmem:[#allocation4 + $0x124] sm:$0xf]  ;;  %v3146_v19 = vor.u32 %v3426_v62, %v3145_v0  ;;  %v3494_v16 = vld [vmem:[%s4366_s4 + $0x9] ss:$0 sm:$0xff] }
 0x34c   :  { %2059 = vmatmul.bf16.gmra.mxu1 %v1862_v13  ;;  %v3442_v13 = vld [vmem:[#allocation4 + $0x194] sm:$0xf0]  ;;  %2290 = vmatpush.bf16.msrb.mxu2 %v3202_v61  ;;  %v3158_v44 = vor.u32 %v3427_v27, %v3155_v54  ;;  %v3428_v61 = vld [vmem:[#allocation4 + $0x12c] sm:$0xf] }
 0x34d   :  { %v4252_v23 = vor.u32 %v3442_v13, %v3209_v28  ;;  %v3166_v28 = vor.u32 %v3428_v61, %v3163_v3  ;;  %v3137_v13 = vld [vmem:[#allocation4 + $0x100] sm:$0xf]  ;;  %v3134_v0 = vld [vmem:[%s4365_s3 + $0x6] ss:$8 sm:$0xf] }
 0x34e   :  { %v4286_v62 = vperm.slane %v3134_v0, 2 }
 0x34f   :  { %2309 = vmatpush.bf16.msrb.mxu3 %v3206_v34  ;;  %2328 = vmatpush.bf16.msra.mxu0 %v4252_v23  ;;  %v3425_v34 = vld [vmem:[#allocation4 + $0x10c] sm:$0xf0] }
 0x350   :  { %2291 = vmatpush.bf16.msrb.mxu2 %v3186_v15 }
 0x353   :  { %2310 = vmatpush.bf16.msrb.mxu3 %v3190_v11  ;;  %2329 = vmatpush.bf16.msra.mxu0 %v4258_v22  ;;  %v3147_v11 = vld [vmem:[#allocation4 + $0x118] sm:$0xf0] }
 0x354   :  { %2021 = vmatmul.bf16.gmra.mxu3 %v1860_v14  ;;  %v4254_v14 = vor.u32 %v3440_v12, %v3211_v51  ;;  %2292 = vmatpush.bf16.msrb.mxu2 %v3170_v30  ;;  %v3423_v12 = vld [vmem:[#allocation4 + $0x104] sm:$0xf]  ;;  %v3138_v51 = vor.u32 %v3425_v34, %v3137_v13  ;;  %v3150_v41 = vor.u32 %v3424_v43, %v3147_v11 }
 0x355   :  { %v3142_v15 = vor.u32 %v3423_v12, %v3139_v9 }
 0x356   :  { %2347 = vmatpush.bf16.msra.mxu1 %v4254_v14 }
 0x357   :  { %2311 = vmatpush.bf16.msrb.mxu3 %v3174_v37  ;;  %2330 = vmatpush.bf16.msra.mxu0 %v3178_v35 }
 0x358   :  { %2293 = vmatpush.bf16.msrb.mxu2 %v3154_v52 }
 0x35a   :  { %2348 = vmatpush.bf16.msra.mxu1 %v4260_v29 }
 0x35b   :  { %2312 = vmatpush.bf16.msrb.mxu3 %v3158_v44  ;;  %2331 = vmatpush.bf16.msra.mxu0 %v3162_v31 }
 0x35c   :  { %2294 = vmatpush.bf16.msrb.mxu2 %v3138_v51 }
 0x35e   :  { %2349 = vmatpush.bf16.msra.mxu1 %v3182_v42 }
 0x35f   :  { %2313 = vmatpush.bf16.msrb.mxu3 %v3142_v15  ;;  %2332 = vmatpush.bf16.msra.mxu0 %v3146_v19  ;;  %v4288_v15 = vperm.slane %v3134_v0, 3 }
 0x360   :  { %3455 = vmatpush.bf16.msra.mxu2 %v4234_v17 }
 0x362   :  { %2350 = vmatpush.bf16.msra.mxu1 %v3166_v28 }
 0x363   :  { %3463 = vmatpush.bf16.msra.mxu3 %v4236_v33 }
 0x364   :  { %3456 = vmatpush.bf16.msra.mxu2 %v4240_v21 }
 0x366   :  { %2351 = vmatpush.bf16.msra.mxu1 %v3150_v41 }
 0x367   :  { %3464 = vmatpush.bf16.msra.mxu3 %v4242_v32  ;;  %v3495_v32 = vld [vmem:[%s4366_s4 + $0xa] ss:$0 sm:$0xff] }
 0x368   :  { %3457 = vmatpush.bf16.msra.mxu2 %v4246_v26 }
 0x36b   :  { %3465 = vmatpush.bf16.msra.mxu3 %v4248_v1 }
 0x36c   :  { %3458 = vmatpush.bf16.msra.mxu2 %v4252_v23  ;;  %v3496_v23 = vld [vmem:[%s4366_s4 + $0xb] ss:$0 sm:$0xff] }
 0x36f   :  { %3466 = vmatpush.bf16.msra.mxu3 %v4254_v14 }
 0x370   :  { %3459 = vmatpush.bf16.msra.mxu2 %v4258_v22 }
 0x373   :  { %3467 = vmatpush.bf16.msra.mxu3 %v4260_v29 }
 0x374   :  { %3460 = vmatpush.bf16.msra.mxu2 %v3178_v35 }
 0x377   :  { %3468 = vmatpush.bf16.msra.mxu3 %v3182_v42 }
 0x378   :  { %3461 = vmatpush.bf16.msra.mxu2 %v3162_v31 }
 0x37b   :  { %3469 = vmatpush.bf16.msra.mxu3 %v3166_v28 }
 0x37c   :  { %3462 = vmatpush.bf16.msra.mxu2 %v3146_v19 }
 0x37f   :  { %3470 = vmatpush.bf16.msra.mxu3 %v3150_v41 }
 0x3ac   :  { %v2036_v40 = vpop.f32.mrf.mxu0 }
 0x3b4   :  { %v2038_v33 = vpop.f32.mrf.mxu0 }
 0x3b9   :  { %v2055_v55 = vpop.f32.mrf.mxu1 }
 0x3bc   :  { %v2041_v37 = vpop.f32.mrf.mxu0 }
 0x3c1   :  { %v2057_v30 = vpop.f32.mrf.mxu1 }
 0x3c4   :  { %v2043_v49 = vpop.f32.mrf.mxu0 }
 0x3c7   :  { %v2017_v53 = vpop.f32.mrf.mxu3 }
 0x3c8   :  { %v2018_v17 = vadd.f32 %v3494_v16, %v2017_v53 }
 0x3c9   :  { %v2060_v36 = vpop.f32.mrf.mxu1 }
 0x3ca   :  { %v2037_v18 = vadd.f32 %v2036_v40, %v2018_v17  ;;  %v2119_v40 = vperm.slane %v3134_v0, 0 }
 0x3cc   :  { %v2056_v21 = vadd.f32 %v2055_v55, %v2037_v18 }
 0x3ce   :  { %v2068_v1 = vmul.f32 %v3495_v32, %v2056_v21 }
 0x3cf   :  { %v2019_v47 = vpop.f32.mrf.mxu3 }
 0x3d0   :  { %v2020_v26 = vadd.f32 %v3494_v16, %v2019_v47  ;;  %v2073_v22 = vadd.f32 %v3496_v23, %v2068_v1 }
 0x3d1   :  { %v2062_v61 = vpop.f32.mrf.mxu1 }
 0x3d2   :  { %v2039_v14 = vadd.f32 %v2038_v33, %v2020_v26  ;;  %v2077_v29 = vmax.f32 %v2073_v22, 0.0 }
 0x3d4   :  { %v2058_v20 = vadd.f32 %v2057_v30, %v2039_v14 }
 0x3d6   :  { %v2069_v58 = vmul.f32 %v3495_v32, %v2058_v20 }
 0x3d7   :  { %v2022_v59 = vpop.f32.mrf.mxu3 }
 0x3d8   :  { %v2074_v8 = vadd.f32 %v3496_v23, %v2069_v58  ;;  %v2023_v63 = vadd.f32 %v3494_v16, %v2022_v59 }
 0x3da   :  { %v2078_v35 = vmax.f32 %v2074_v8, 0.0  ;;  %v2042_v27 = vadd.f32 %v2041_v37, %v2023_v63 }
 0x3dc   :  { %v2114_v52 = vpack.c.bf16 %v2078_v35, %v2077_v29  ;;  %v2061_v54 = vadd.f32 %v2060_v36, %v2042_v27 }
 0x3de   :  { %2295 = vmatmul.bf16.vlgmr.msrb.gmra.mxu2 %v2114_v52  ;;  %2314 = vmatmul.bf16.vlgmr.msrb.gmra.mxu3 %v2114_v52  ;;  %v2070_v44 = vmul.f32 %v3495_v32, %v2061_v54 }
 0x3df   :  { %2333 = vmatmul.bf16.vlgmr.msra.gmra.mxu0 %v2114_v52  ;;  %2352 = vmatmul.bf16.vlgmr.msra.gmra.mxu1 %v2114_v52  ;;  %v2024_v42 = vpop.f32.mrf.mxu3 }
 0x3e0   :  { %v2025_v7 = vadd.f32 %v3494_v16, %v2024_v42  ;;  %v2075_v28 = vadd.f32 %v3496_v23, %v2070_v44  ;;  %v2120_v16 = vperm.slane %v3134_v0, 1 }
 0x3e2   :  { %v2044_v31 = vadd.f32 %v2043_v49, %v2025_v7  ;;  %v2079_v12 = vmax.f32 %v2075_v28, 0.0 }
 0x3e4   :  { %v2063_v3 = vadd.f32 %v2062_v61, %v2044_v31 }
 0x3e6   :  { %v2071_v13 = vmul.f32 %v3495_v32, %v2063_v3 }
 0x3e8   :  { %v2076_v34 = vadd.f32 %v3496_v23, %v2071_v13 }
 0x3ea   :  { %v2080_v51 = vmax.f32 %v2076_v34, 0.0 }
 0x3ec   :  { %v2115_v9 = vpack.c.bf16 %v2080_v51, %v2079_v12 }
 0x3ee   :  { %2300 = vmatmul.bf16.gmra.mxu2 %v2115_v9  ;;  %2319 = vmatmul.bf16.gmra.mxu3 %v2115_v9 }
 0x3fe   :  { %2338 = vmatmul.bf16.vlgmr.msra.gmra.mxu2 %v2115_v9  ;;  %2357 = vmatmul.bf16.vlgmr.msra.gmra.mxu3 %v2115_v9 }
 0x45c   :  { %v2334_v19 = vpop.f32.mrf.mxu0  ;;  %v2353_v43 = vpop.f32.mrf.mxu1 }
 0x45d   :  { %v2335_v11 = vadd.f32 %v2334_v19, %v4286_v62  ;;  %v2354_v41 = vadd.f32 %v2353_v43, %v4288_v15 }
 0x45f   :  { %v2365_v55 = vadd.f32 %v2335_v11, %v4082_v60  ;;  %v2366_v53 = vadd.f32 %v2354_v41, %v4107_v45 }
 0x461   :  { %v2381_v17 = vmul.f32 0.5, %v2365_v55  ;;  %v2382_v18 = vmul.f32 0.5, %v2366_v53  ;;  %v2296_v33 = vpop.f32.mrf.mxu2  ;;  %v2315_v21 = vpop.f32.mrf.mxu3 }
 0x462   :  { %v2297_v32 = vadd.f32 %v2296_v33, %v2119_v40  ;;  %v2316_v30 = vadd.f32 %v2315_v21, %v2120_v16 }
 0x463   :  { %2397 = vst [vmem:[%s4370_s8 + $0x10] sm:$0xff] %v2381_v17 }
 0x464   :  { %2398 = vst [vmem:[%s4370_s8 + $0x18] sm:$0xff] %v2382_v18  ;;  %v2363_v47 = vadd.f32 %v2297_v32, %v4101_v57  ;;  %v2364_v60 = vadd.f32 %v2316_v30, %v4074_v48  ;;  %v2336_v26 = vpop.f32.mrf.mxu0  ;;  %v2355_v45 = vpop.f32.mrf.mxu1 }
 0x465   :  { %v2337_v1 = vadd.f32 %v2336_v26, %v4286_v62  ;;  %v2356_v23 = vadd.f32 %v2355_v45, %v4288_v15 }
 0x466   :  { %v2379_v14 = vmul.f32 0.5, %v2363_v47  ;;  %v2380_v20 = vmul.f32 0.5, %v2364_v60 }
 0x467   :  { %v2369_v22 = vadd.f32 %v2337_v1, %v4111_v24  ;;  %v2370_v58 = vadd.f32 %v2356_v23, %v4138_v38 }
 0x468   :  { %2395 = vst [vmem:[%s4370_s8] sm:$0xff] %v2379_v14 }
 0x469   :  { %2396 = vst [vmem:[%s4370_s8 + $0x8] sm:$0xff] %v2380_v20  ;;  %v2385_v48 = vmul.f32 0.5, %v2369_v22  ;;  %v2386_v57 = vmul.f32 0.5, %v2370_v58  ;;  %v2298_v37 = vpop.f32.mrf.mxu2  ;;  %v2317_v59 = vpop.f32.mrf.mxu3 }
 0x46a   :  { %v2299_v8 = vadd.f32 %v2298_v37, %v2119_v40  ;;  %v2318_v63 = vadd.f32 %v2317_v59, %v2120_v16 }
 0x46b   :  { %2401 = vst [vmem:[%s4370_s8 + $0x30] sm:$0xff] %v2385_v48 }
 0x46c   :  { %2402 = vst [vmem:[%s4370_s8 + $0x38] sm:$0xff] %v2386_v57  ;;  %v2367_v24 = vadd.f32 %v2299_v8, %v4135_v25  ;;  %v2368_v38 = vadd.f32 %v2318_v63, %v4105_v50 }
 0x46e   :  { %v2383_v36 = vmul.f32 0.5, %v2367_v24  ;;  %v2384_v29 = vmul.f32 0.5, %v2368_v38 }
 0x470   :  { %2399 = vst [vmem:[%s4370_s8 + $0x20] sm:$0xff] %v2383_v36 }
 0x471   :  { %2400 = vst [vmem:[%s4370_s8 + $0x28] sm:$0xff] %v2384_v29  ;;  %v2301_v35 = vpop.f32.mrf.mxu2  ;;  %v2320_v27 = vpop.f32.mrf.mxu3 }
 0x472   :  { %v2302_v52 = vadd.f32 %v2301_v35, %v2119_v40  ;;  %v2321_v54 = vadd.f32 %v2320_v27, %v2120_v16 }
 0x474   :  { %v2371_v42 = vadd.f32 %v2302_v52, %v4165_v4  ;;  %v2372_v25 = vadd.f32 %v2321_v54, %v4148_v2 }
 0x476   :  { %v2387_v7 = vmul.f32 0.5, %v2371_v42  ;;  %v2388_v50 = vmul.f32 0.5, %v2372_v25 }
 0x478   :  { %2403 = vst [vmem:[%s4370_s8 + $0x40] sm:$0xff] %v2387_v7 }
 0x479   :  { %2404 = vst [vmem:[%s4370_s8 + $0x48] sm:$0xff] %v2388_v50  ;;  %v2303_v49 = vpop.f32.mrf.mxu2  ;;  %v2322_v44 = vpop.f32.mrf.mxu3 }
 0x47a   :  { %v2304_v31 = vadd.f32 %v2303_v49, %v2119_v40  ;;  %v2323_v61 = vadd.f32 %v2322_v44, %v2120_v16 }
 0x47c   :  { %v2375_v3 = vadd.f32 %v2304_v31, %v4189_v39  ;;  %v2376_v4 = vadd.f32 %v2323_v61, %v4167_v46 }
 0x47e   :  { %v2391_v28 = vmul.f32 0.5, %v2375_v3  ;;  %v2392_v2 = vmul.f32 0.5, %v2376_v4 }
 0x480   :  { %2407 = vst [vmem:[%s4370_s8 + $0x60] sm:$0xff] %v2391_v28 }
 0x481   :  { %2408 = vst [vmem:[%s4370_s8 + $0x68] sm:$0xff] %v2392_v2  ;;  %v2339_v13 = vpop.f32.mrf.mxu2  ;;  %v2358_v34 = vpop.f32.mrf.mxu3 }
 0x482   :  { %v2340_v12 = vadd.f32 %v2339_v13, %v4286_v62  ;;  %v2359_v51 = vadd.f32 %v2358_v34, %v4288_v15 }
 0x484   :  { %v2373_v39 = vadd.f32 %v2340_v12, %v4152_v10  ;;  %v2374_v46 = vadd.f32 %v2359_v51, %v4169_v56 }
 0x486   :  { %v2389_v9 = vmul.f32 0.5, %v2373_v39  ;;  %v2390_v0 = vmul.f32 0.5, %v2374_v46 }
 0x488   :  { %2405 = vst [vmem:[%s4370_s8 + $0x50] sm:$0xff] %v2389_v9 }
 0x489   :  { %2406 = vst [vmem:[%s4370_s8 + $0x58] sm:$0xff] %v2390_v0  ;;  %v2341_v19 = vpop.f32.mrf.mxu2  ;;  %v2360_v43 = vpop.f32.mrf.mxu3 }
 0x48a   :  { %v2342_v11 = vadd.f32 %v2341_v19, %v4286_v62  ;;  %v2361_v41 = vadd.f32 %v2360_v43, %v4288_v15 }
 0x48c   :  { %v2377_v10 = vadd.f32 %v2342_v11, %v4171_v5  ;;  %v2378_v56 = vadd.f32 %v2361_v41, %v4191_v6 }
 0x48e   :  { %v2393_v40 = vmul.f32 0.5, %v2377_v10  ;;  %v2394_v16 = vmul.f32 0.5, %v2378_v56 }
 0x490   :  { %2409 = vst [vmem:[%s4370_s8 + $0x70] sm:$0xff] %v2393_v40 }
 0x491   :  { %2410 = vst [vmem:[%s4370_s8 + $0x78] sm:$0xff] %v2394_v16 }
 0x492   :  { %2415 = vsyncpa [#allocation3], 1 }
 0x493   :  { %2416 = vsyncpa [#allocation5], 1 }

</bundles_post_ra>
